<compile_context>
chip_gen: v5e
topology: v5e:2x2
jax: 0.10.0
libtpu: 0.0.40
codegen_flags: <defaults>
</compile_context>

<pallas_src>
import numpy as np
import jax
import jax.numpy as jnp
from jax import lax
from jax.experimental import pallas as pl
from jax.experimental.pallas import tpu as pltpu

# ----------------------------------------------------------------------------
# Hyperparameters (scaled-down TimesBlock)
# ----------------------------------------------------------------------------
SEQ_LEN = 8
PRED_LEN = 8
TOP_K = 2
D_MODEL = 8                  # C: d_model == conv in/out channels
D_FF = 8                     # hidden channels of the inception sandwich
NUM_KERNELS = 3              # inception kernel sizes 1, 3, 5
KMAX = 2 * NUM_KERNELS - 1   # largest kernel size (effective single conv)
PAD = NUM_KERNELS - 1        # "same" padding of the largest kernel
KK = KMAX * KMAX


def _round_up(v, m):
    return ((v + m - 1) // m) * m


def _gelu_tanh(x):
    # TODO(synk): nn.GELU() defaults to the exact erf form; Mosaic has no erf
    # lowering here, so use the tanh approximation (|err| < 1e-3).
    c = 0.7978845608028654  # sqrt(2/pi)
    return 0.5 * x * (1.0 + jnp.tanh(c * (x + 0.044715 * x * x * x)))


# ----------------------------------------------------------------------------
# Static per-period geometry and im2col validity masks (host-side NumPy)
# ----------------------------------------------------------------------------
def _period_geoms(periods, L):
    geoms, row_off = [], 0
    for p in periods:
        p = int(p)
        length = L if L % p == 0 else (L // p + 1) * p
        H, W = length // p, p
        HW = H * W
        ext_pad = _round_up(PAD * W + PAD, 8)     # headroom for shifted reads
        geoms.append(dict(H=H, W=W, HW=HW, row_off=row_off,
                          ext_pad=ext_pad, ext_rows=2 * ext_pad + HW))
        row_off += HW
    return geoms, row_off


def _build_masks(geoms, total_rows, L, c_in1, c_in2):
    """0/1 masks matching the im2col LHS layouts of conv1 / conv2."""
    m1 = np.zeros((total_rows, KK * c_in1), np.float32)
    m2 = np.zeros((total_rows, KK * c_in2), np.float32)
    for g in geoms:
        H, W, HW, off = g["H"], g["W"], g["HW"], g["row_off"]
        for l in range(HW):
            h, w = l // W, l % W
            for dh in range(KMAX):
                for dw in range(KMAX):
                    hp, wp = h + dh - PAD, w + dw - PAD
                    if 0 <= hp < H and 0 <= wp < W:
                        k = dh * KMAX + dw
                        m2[off + l, k * c_in2:(k + 1) * c_in2] = 1.0
                        if hp * W + wp < L:       # time-padded inputs are zero
                            m1[off + l, k * c_in1:(k + 1) * c_in1] = 1.0
    return jnp.asarray(m1), jnp.asarray(m2)


# ----------------------------------------------------------------------------
# Fused TimesBlock kernel: im2col conv -> GELU -> im2col conv -> combine
# ----------------------------------------------------------------------------
def _make_fused_kernel(geoms, L, C, c_mid):
    n_periods = len(geoms)

    def kernel(pw_ref, x_ref, w1_ref, b1_ref, w2_ref, b2_ref,
               m1_ref, m2_ref, o_ref, *scratch):
        # pw_ref : (B, k) f32 softmax weights in SMEM (scalar prefetch)
        # x_ref  : (1, L, C)   time-major residual / conv input
        # w*_ref : (KK*cin, cout) bf16 flattened effective inception weights
        # b*_ref : (1, cout) f32 biases
        # m*_ref : (total_rows, KK*cin) f32 0/1 im2col validity masks
        # o_ref  : (1, L, C) f32 output
        # scratch: one (ext_rows, cmax) frame buffer per period + im2col LHS
        ext_refs = scratch[:n_periods]
        lhs_ref = scratch[n_periods]
        b = pl.program_id(0)
        x_img = x_ref[0]                              # (L, C) f32

        def build_lhs(width):
            # Gather the KK shifted taps of every period's frame into the
            # shared im2col LHS scratch.  Rows read outside the frame interior
            # are garbage and are zeroed by the mask before the matmul.
            for g, ext in zip(geoms, ext_refs):
                W, HW = g["W"], g["HW"]
                off, ep = g["row_off"], g["ext_pad"]
                for dh in range(KMAX):
                    for dw in range(KMAX):
                        k = dh * KMAX + dw
                        s = ep + (dh - PAD) * W + (dw - PAD)
                        lhs_ref[off:off + HW, k * width:(k + 1) * width] = (
                            ext[s:s + HW, 0:width])

        # ---- conv1: collapsed inception d_model -> d_ff (one MXU matmul) ----
        for g, ext in zip(geoms, ext_refs):
            ep, HW = g["ext_pad"], g["HW"]
            ext[ep:ep + L, 0:C] = x_img
            if HW > L:                                # static branch (time pad)
                ext[ep + L:ep + HW, 0:C] = jnp.zeros((HW - L, C), jnp.float32)
        build_lhs(C)
        lhs1 = lhs_ref[:, 0:KK * C]
        lhs1 = jnp.where(m1_ref[...] > 0.5, lhs1, 0.0).astype(jnp.bfloat16)
        h1 = jnp.dot(lhs1, w1_ref[...], preferred_element_type=jnp.float32)
        y = _gelu_tanh(h1 + b1_ref[...])              # (total_rows, c_mid) f32

        # ---- conv2: collapsed inception d_ff -> d_model (one MXU matmul) ----
        for g, ext in zip(geoms, ext_refs):
            ep, HW, off = g["ext_pad"], g["HW"], g["row_off"]
            ext[ep:ep + HW, 0:c_mid] = y[off:off + HW, :]
        build_lhs(c_mid)
        lhs2 = lhs_ref[:, 0:KK * c_mid]
        lhs2 = jnp.where(m2_ref[...] > 0.5, lhs2, 0.0).astype(jnp.bfloat16)
        out2 = jnp.dot(lhs2, w2_ref[...], preferred_element_type=jnp.float32)
        out2 = out2 + b2_ref[...]                     # (total_rows, C)

        # ---- softmax-weighted sum over periods + residual (epilogue) ----
        res = x_img
        for i, g in enumerate(geoms):
            off = g["row_off"]
            res = res + out2[off:off + L, :] * pw_ref[b, i]
        o_ref[0] = res

    return kernel


def _fused_timesblock_call(x_lc, pw_soft, w1, b1, w2, b2, m1, m2,
                           geoms, total_rows):
    B, L, C = x_lc.shape
    c_mid = w1.shape[1]
    cmax = max(C, c_mid)
    kernel = _make_fused_kernel(geoms, L, C, c_mid)
    scratch_shapes = [pltpu.VMEM((g["ext_rows"], cmax), jnp.float32)
                      for g in geoms]
    scratch_shapes.append(pltpu.VMEM((total_rows, KK * cmax), jnp.float32))
    grid_spec = pltpu.PrefetchScalarGridSpec(
        num_scalar_prefetch=1,                  # softmax(period_weight) -> SMEM
        grid=(B,),
        in_specs=[
            pl.BlockSpec((1, L, C), lambda b, pw: (b, 0, 0)),
            pl.BlockSpec(w1.shape, lambda b, pw: (0, 0)),
            pl.BlockSpec(b1.shape, lambda b, pw: (0, 0)),
            pl.BlockSpec(w2.shape, lambda b, pw: (0, 0)),
            pl.BlockSpec(b2.shape, lambda b, pw: (0, 0)),
            pl.BlockSpec(m1.shape, lambda b, pw: (0, 0)),
            pl.BlockSpec(m2.shape, lambda b, pw: (0, 0)),
        ],
        out_specs=pl.BlockSpec((1, L, C), lambda b, pw: (b, 0, 0)),
        scratch_shapes=scratch_shapes,
    )
    return pl.pallas_call(
        kernel,
        out_shape=jax.ShapeDtypeStruct((B, L, C), jnp.float32),
        grid_spec=grid_spec,
        compiler_params=pltpu.CompilerParams(
            dimension_semantics=("parallel",)),
    )(pw_soft, x_lc, w1, b1, w2, b2, m1, m2)


# ----------------------------------------------------------------------------
# Parameters (kaiming_normal fan_out like the PyTorch init), collapsed weights
# ----------------------------------------------------------------------------
def init_params(key):
    keys = jax.random.split(key, 2 * NUM_KERNELS)

    def make_eff(ks, c_in, c_out):
        # mean over NUM_KERNELS convs == one KMAXxKMAX conv with averaged,
        # zero-padded weights (the inception stack(...).mean(-1) is linear).
        w_sum = jnp.zeros((KMAX, KMAX, c_in, c_out), jnp.float32)
        for i in range(NUM_KERNELS):
            ksz = 2 * i + 1
            std = np.sqrt(2.0 / (c_out * ksz * ksz))  # kaiming, fan_out, relu
            wi = jax.random.normal(ks[i], (ksz, ksz, c_in, c_out),
                                   jnp.float32) * std
            off = PAD - i
            wi = jnp.pad(wi, ((off, off), (off, off), (0, 0), (0, 0)))
            w_sum = w_sum + wi
        w_eff = (w_sum / NUM_KERNELS).reshape(KK * c_in, c_out)
        b_eff = jnp.zeros((1, c_out), jnp.float32)    # conv biases init to 0
        return w_eff, b_eff

    w1, b1 = make_eff(keys[:NUM_KERNELS], D_MODEL, D_FF)
    w2, b2 = make_eff(keys[NUM_KERNELS:], D_FF, D_MODEL)
    return w1, b1, w2, b2


# ----------------------------------------------------------------------------
# FFT_for_Period (rfft over dim=1 as in the reference; top-k on host, matching
# the reference's .detach().cpu().numpy())
# ----------------------------------------------------------------------------
def _fft_for_period(x, k=TOP_K):
    xf = jnp.fft.rfft(x.astype(jnp.float32), axis=1)
    amp = jnp.abs(xf)                                  # (B, C//2+1, L)
    freq = np.array(amp.mean(axis=0).mean(axis=-1))
    freq[0] = 0.0
    order = np.argsort(-freq)
    top_list = np.asarray([int(t) for t in order if t != 0][:k])  # guard /0
    periods = [int(x.shape[1] // t) for t in top_list]
    period_weight = amp.mean(axis=-1)[:, top_list]     # (B, k)
    return periods, period_weight


# ----------------------------------------------------------------------------
# TimesBlock forward (Pallas hot path)
# ----------------------------------------------------------------------------
def timesblock_forward(x, params):
    B, C, L = x.shape
    assert C == D_MODEL and L == SEQ_LEN + PRED_LEN
    w1, b1, w2, b2 = params

    periods, period_weight = _fft_for_period(x, TOP_K)
    pw_soft = jax.nn.softmax(period_weight, axis=1).astype(jnp.float32)

    geoms, total_rows = _period_geoms(periods, L)
    m1, m2 = _build_masks(geoms, total_rows, L, C, D_FF)

    x_lc = jnp.transpose(x, (0, 2, 1)).astype(jnp.float32)   # (B, L, C)
    out_lc = _fused_timesblock_call(
        x_lc, pw_soft,
        w1.astype(jnp.bfloat16), b1, w2.astype(jnp.bfloat16), b2,
        m1, m2, geoms, total_rows)
    return jnp.transpose(out_lc, (0, 2, 1))                  # (B, C, L)


# ----------------------------------------------------------------------------
# Pure JAX/XLA reference (f32 conv path) for validation
# ----------------------------------------------------------------------------
def timesblock_reference(x, params):
    B, C, L = x.shape
    w1, b1, w2, b2 = params
    periods, period_weight = _fft_for_period(x, TOP_K)
    pw_soft = jax.nn.softmax(period_weight, axis=1)

    def conv_eff(img, w_flat, bias):
        cin, cout = img.shape[1], w_flat.shape[1]
        w = w_flat.reshape(KMAX, KMAX, cin, cout).transpose(3, 2, 0, 1)  # OIHW
        out = lax.conv_general_dilated(
            img, w, window_strides=(1, 1),
            padding=((PAD, PAD), (PAD, PAD)),
            dimension_numbers=("NCHW", "OIHW", "NCHW"))
        return out + bias.reshape(1, cout, 1, 1)

    res_list = []
    for p in periods:
        length = L if L % p == 0 else (L // p + 1) * p
        xx = x if length == L else jnp.concatenate(
            [x, jnp.zeros((B, C, length - L), x.dtype)], axis=-1)
        img = xx.reshape(B, C, length // p, p)
        h = _gelu_tanh(conv_eff(img, w1, b1))
        o = conv_eff(h, w2, b2)
        res_list.append(o.reshape(B, C, length)[:, :, :L])
    res = jnp.stack(res_list, axis=-1)                        # (B, C, L, k)
    return jnp.sum(res * pw_soft[:, None, None, :], axis=-1) + x


if __name__ == "__main__":
    key = jax.random.PRNGKey(0)
    k_x, k_p = jax.random.split(key)
    B = 2
    L = SEQ_LEN + PRED_LEN
    x = jax.random.normal(k_x, (B, D_MODEL, L), jnp.float32)
    params = init_params(k_p)

    out = timesblock_forward(x, params)
    out = jax.block_until_ready(out)
    assert out.shape == (B, D_MODEL, L)
    assert bool(jnp.all(jnp.isfinite(out)))

    ref = timesblock_reference(x, params)
    err = float(jnp.max(jnp.abs(out - ref)))
    assert err < 1e-1, f"mismatch vs reference: {err}"   # bf16 matmul tolerance
    print("KERNEL_OK")
</pallas_src>

<mosaic_0001>
module attributes {stable_mosaic.version = 11 : i64} {
  func.func @kernel(%arg0: i32, %arg1: memref<2x2xf32, #tpu.memory_space<smem>>, %arg2: memref<1x16x8xf32, #tpu.memory_space<vmem>>, %arg3: memref<200x8xbf16, #tpu.memory_space<vmem>>, %arg4: memref<1x8xf32, #tpu.memory_space<vmem>>, %arg5: memref<200x8xbf16, #tpu.memory_space<vmem>>, %arg6: memref<1x8xf32, #tpu.memory_space<vmem>>, %arg7: memref<32x200xf32, #tpu.memory_space<vmem>>, %arg8: memref<32x200xf32, #tpu.memory_space<vmem>>, %arg9: memref<1x16x8xf32, #tpu.memory_space<vmem>>, %arg10: memref<32x8xf32, #tpu.memory_space<vmem>>, %arg11: memref<64x8xf32, #tpu.memory_space<vmem>>, %arg12: memref<32x200xf32, #tpu.memory_space<vmem>>) attributes {dimension_semantics = [#tpu.dimension_semantics<parallel>], iteration_bounds = array<i64: 2>, scalar_prefetch = 1 : i64, scratch_operands = 3 : i64, tpu.core_type = #tpu.core_type<tc>, window_params = [{transform_indices = @transform_0, window_bounds = array<i64: 1, 16, 8>}, {pipeline_mode = #tpu.pipeline_mode<synchronous>, transform_indices = @transform_1, window_bounds = array<i64: 200, 8>}, {pipeline_mode = #tpu.pipeline_mode<synchronous>, transform_indices = @transform_2, window_bounds = array<i64: 1, 8>}, {pipeline_mode = #tpu.pipeline_mode<synchronous>, transform_indices = @transform_3, window_bounds = array<i64: 200, 8>}, {pipeline_mode = #tpu.pipeline_mode<synchronous>, transform_indices = @transform_4, window_bounds = array<i64: 1, 8>}, {pipeline_mode = #tpu.pipeline_mode<synchronous>, transform_indices = @transform_5, window_bounds = array<i64: 32, 200>}, {pipeline_mode = #tpu.pipeline_mode<synchronous>, transform_indices = @transform_6, window_bounds = array<i64: 32, 200>}, {transform_indices = @transform_7, window_bounds = array<i64: 1, 16, 8>}]} {
    %c0 = arith.constant 0 : index
    %c0_0 = arith.constant 0 : index
    %c0_1 = arith.constant 0 : index
    %0 = vector.load %arg2[%c0, %c0_0, %c0_1] : memref<1x16x8xf32, #tpu.memory_space<vmem>>, vector<1x16x8xf32>
    %1 = vector.shape_cast %0 : vector<1x16x8xf32> to vector<16x8xf32>
    %c8 = arith.constant 8 : index
    %c0_2 = arith.constant 0 : index
    %2 = vector.load %arg10[%c8, %c0_2] : memref<32x8xf32, #tpu.memory_space<vmem>>, vector<16x8xf32>
    tpu.vector_store %arg10[%c8, %c0_2], %1 {strides = array<i32>} : memref<32x8xf32, #tpu.memory_space<vmem>>, vector<16x8xf32>,
    %c24 = arith.constant 24 : index
    %c0_3 = arith.constant 0 : index
    %3 = vector.load %arg11[%c24, %c0_3] : memref<64x8xf32, #tpu.memory_space<vmem>>, vector<16x8xf32>
    tpu.vector_store %arg11[%c24, %c0_3], %1 {strides = array<i32>} : memref<64x8xf32, #tpu.memory_space<vmem>>, vector<16x8xf32>,
    %c2 = arith.constant 2 : index
    %c0_4 = arith.constant 0 : index
    %4 = vector.load %arg10[%c2, %c0_4] : memref<32x8xf32, #tpu.memory_space<vmem>>, vector<16x8xf32>
    %c0_5 = arith.constant 0 : index
    %c0_6 = arith.constant 0 : index
    %5 = vector.load %arg12[%c0_5, %c0_6] : memref<32x200xf32, #tpu.memory_space<vmem>>, vector<16x8xf32>
    tpu.vector_store %arg12[%c0_5, %c0_6], %4 {strides = array<i32>} : memref<32x200xf32, #tpu.memory_space<vmem>>, vector<16x8xf32>,
    %c3 = arith.constant 3 : index
    %c0_7 = arith.constant 0 : index
    %6 = vector.load %arg10[%c3, %c0_7] : memref<32x8xf32, #tpu.memory_space<vmem>>, vector<16x8xf32>
    %c0_8 = arith.constant 0 : index
    %c8_9 = arith.constant 8 : index
    %7 = vector.load %arg12[%c0_8, %c8_9] : memref<32x200xf32, #tpu.memory_space<vmem>>, vector<16x8xf32>
    tpu.vector_store %arg12[%c0_8, %c8_9], %6 {strides = array<i32>} : memref<32x200xf32, #tpu.memory_space<vmem>>, vector<16x8xf32>,
    %c4 = arith.constant 4 : index
    %c0_10 = arith.constant 0 : index
    %8 = vector.load %arg10[%c4, %c0_10] : memref<32x8xf32, #tpu.memory_space<vmem>>, vector<16x8xf32>
    %c0_11 = arith.constant 0 : index
    %c16 = arith.constant 16 : index
    %9 = vector.load %arg12[%c0_11, %c16] : memref<32x200xf32, #tpu.memory_space<vmem>>, vector<16x8xf32>
    tpu.vector_store %arg12[%c0_11, %c16], %8 {strides = array<i32>} : memref<32x200xf32, #tpu.memory_space<vmem>>, vector<16x8xf32>,
    %c5 = arith.constant 5 : index
    %c0_12 = arith.constant 0 : index
    %10 = vector.load %arg10[%c5, %c0_12] : memref<32x8xf32, #tpu.memory_space<vmem>>, vector<16x8xf32>
    %c0_13 = arith.constant 0 : index
    %c24_14 = arith.constant 24 : index
    %11 = vector.load %arg12[%c0_13, %c24_14] : memref<32x200xf32, #tpu.memory_space<vmem>>, vector<16x8xf32>
    tpu.vector_store %arg12[%c0_13, %c24_14], %10 {strides = array<i32>} : memref<32x200xf32, #tpu.memory_space<vmem>>, vector<16x8xf32>,
    %c6 = arith.constant 6 : index
    %c0_15 = arith.constant 0 : index
    %12 = vector.load %arg10[%c6, %c0_15] : memref<32x8xf32, #tpu.memory_space<vmem>>, vector<16x8xf32>
    %c0_16 = arith.constant 0 : index
    %c32 = arith.constant 32 : index
    %13 = vector.load %arg12[%c0_16, %c32] : memref<32x200xf32, #tpu.memory_space<vmem>>, vector<16x8xf32>
    tpu.vector_store %arg12[%c0_16, %c32], %12 {strides = array<i32>} : memref<32x200xf32, #tpu.memory_space<vmem>>, vector<16x8xf32>,
    %c4_17 = arith.constant 4 : index
    %c0_18 = arith.constant 0 : index
    %14 = vector.load %arg10[%c4_17, %c0_18] : memref<32x8xf32, #tpu.memory_space<vmem>>, vector<16x8xf32>
    %c0_19 = arith.constant 0 : index
    %c40 = arith.constant 40 : index
    %15 = vector.load %arg12[%c0_19, %c40] : memref<32x200xf32, #tpu.memory_space<vmem>>, vector<16x8xf32>
    tpu.vector_store %arg12[%c0_19, %c40], %14 {strides = array<i32>} : memref<32x200xf32, #tpu.memory_space<vmem>>, vector<16x8xf32>,
    %c5_20 = arith.constant 5 : index
    %c0_21 = arith.constant 0 : index
    %16 = vector.load %arg10[%c5_20, %c0_21] : memref<32x8xf32, #tpu.memory_space<vmem>>, vector<16x8xf32>
    %c0_22 = arith.constant 0 : index
    %c48 = arith.constant 48 : index
    %17 = vector.load %arg12[%c0_22, %c48] : memref<32x200xf32, #tpu.memory_space<vmem>>, vector<16x8xf32>
    tpu.vector_store %arg12[%c0_22, %c48], %16 {strides = array<i32>} : memref<32x200xf32, #tpu.memory_space<vmem>>, vector<16x8xf32>,
    %c6_23 = arith.constant 6 : index
    %c0_24 = arith.constant 0 : index
    %18 = vector.load %arg10[%c6_23, %c0_24] : memref<32x8xf32, #tpu.memory_space<vmem>>, vector<16x8xf32>
    %c0_25 = arith.constant 0 : index
    %c56 = arith.constant 56 : index
    %19 = vector.load %arg12[%c0_25, %c56] : memref<32x200xf32, #tpu.memory_space<vmem>>, vector<16x8xf32>
    tpu.vector_store %arg12[%c0_25, %c56], %18 {strides = array<i32>} : memref<32x200xf32, #tpu.memory_space<vmem>>, vector<16x8xf32>,
    %c7 = arith.constant 7 : index
    %c0_26 = arith.constant 0 : index
    %20 = vector.load %arg10[%c7, %c0_26] : memref<32x8xf32, #tpu.memory_space<vmem>>, vector<16x8xf32>
    %c0_27 = arith.constant 0 : index
    %c64 = arith.constant 64 : index
    %21 = vector.load %arg12[%c0_27, %c64] : memref<32x200xf32, #tpu.memory_space<vmem>>, vector<16x8xf32>
    tpu.vector_store %arg12[%c0_27, %c64], %20 {strides = array<i32>} : memref<32x200xf32, #tpu.memory_space<vmem>>, vector<16x8xf32>,
    %c8_28 = arith.constant 8 : index
    %c0_29 = arith.constant 0 : index
    %22 = vector.load %arg10[%c8_28, %c0_29] : memref<32x8xf32, #tpu.memory_space<vmem>>, vector<16x8xf32>
    %c0_30 = arith.constant 0 : index
    %c72 = arith.constant 72 : index
    %23 = vector.load %arg12[%c0_30, %c72] : memref<32x200xf32, #tpu.memory_space<vmem>>, vector<16x8xf32>
    tpu.vector_store %arg12[%c0_30, %c72], %22 {strides = array<i32>} : memref<32x200xf32, #tpu.memory_space<vmem>>, vector<16x8xf32>,
    %c6_31 = arith.constant 6 : index
    %c0_32 = arith.constant 0 : index
    %24 = vector.load %arg10[%c6_31, %c0_32] : memref<32x8xf32, #tpu.memory_space<vmem>>, vector<16x8xf32>
    %c0_33 = arith.constant 0 : index
    %c80 = arith.constant 80 : index
    %25 = vector.load %arg12[%c0_33, %c80] : memref<32x200xf32, #tpu.memory_space<vmem>>, vector<16x8xf32>
    tpu.vector_store %arg12[%c0_33, %c80], %24 {strides = array<i32>} : memref<32x200xf32, #tpu.memory_space<vmem>>, vector<16x8xf32>,
    %c7_34 = arith.constant 7 : index
    %c0_35 = arith.constant 0 : index
    %26 = vector.load %arg10[%c7_34, %c0_35] : memref<32x8xf32, #tpu.memory_space<vmem>>, vector<16x8xf32>
    %c0_36 = arith.constant 0 : index
    %c88 = arith.constant 88 : index
    %27 = vector.load %arg12[%c0_36, %c88] : memref<32x200xf32, #tpu.memory_space<vmem>>, vector<16x8xf32>
    tpu.vector_store %arg12[%c0_36, %c88], %26 {strides = array<i32>} : memref<32x200xf32, #tpu.memory_space<vmem>>, vector<16x8xf32>,
    %c8_37 = arith.constant 8 : index
    %c0_38 = arith.constant 0 : index
    %28 = vector.load %arg10[%c8_37, %c0_38] : memref<32x8xf32, #tpu.memory_space<vmem>>, vector<16x8xf32>
    %c0_39 = arith.constant 0 : index
    %c96 = arith.constant 96 : index
    %29 = vector.load %arg12[%c0_39, %c96] : memref<32x200xf32, #tpu.memory_space<vmem>>, vector<16x8xf32>
    tpu.vector_store %arg12[%c0_39, %c96], %28 {strides = array<i32>} : memref<32x200xf32, #tpu.memory_space<vmem>>, vector<16x8xf32>,
    %c9 = arith.constant 9 : index
    %c0_40 = arith.constant 0 : index
    %30 = vector.load %arg10[%c9, %c0_40] : memref<32x8xf32, #tpu.memory_space<vmem>>, vector<16x8xf32>
    %c0_41 = arith.constant 0 : index
    %c104 = arith.constant 104 : index
    %31 = vector.load %arg12[%c0_41, %c104] : memref<32x200xf32, #tpu.memory_space<vmem>>, vector<16x8xf32>
    tpu.vector_store %arg12[%c0_41, %c104], %30 {strides = array<i32>} : memref<32x200xf32, #tpu.memory_space<vmem>>, vector<16x8xf32>,
    %c10 = arith.constant 10 : index
    %c0_42 = arith.constant 0 : index
    %32 = vector.load %arg10[%c10, %c0_42] : memref<32x8xf32, #tpu.memory_space<vmem>>, vector<16x8xf32>
    %c0_43 = arith.constant 0 : index
    %c112 = arith.constant 112 : index
    %33 = vector.load %arg12[%c0_43, %c112] : memref<32x200xf32, #tpu.memory_space<vmem>>, vector<16x8xf32>
    tpu.vector_store %arg12[%c0_43, %c112], %32 {strides = array<i32>} : memref<32x200xf32, #tpu.memory_space<vmem>>, vector<16x8xf32>,
    %c8_44 = arith.constant 8 : index
    %c0_45 = arith.constant 0 : index
    %34 = vector.load %arg10[%c8_44, %c0_45] : memref<32x8xf32, #tpu.memory_space<vmem>>, vector<16x8xf32>
    %c0_46 = arith.constant 0 : index
    %c120 = arith.constant 120 : index
    %35 = vector.load %arg12[%c0_46, %c120] : memref<32x200xf32, #tpu.memory_space<vmem>>, vector<16x8xf32>
    tpu.vector_store %arg12[%c0_46, %c120], %34 {strides = array<i32>} : memref<32x200xf32, #tpu.memory_space<vmem>>, vector<16x8xf32>,
    %c9_47 = arith.constant 9 : index
    %c0_48 = arith.constant 0 : index
    %36 = vector.load %arg10[%c9_47, %c0_48] : memref<32x8xf32, #tpu.memory_space<vmem>>, vector<16x8xf32>
    %c0_49 = arith.constant 0 : index
    %c128 = arith.constant 128 : index
    %37 = vector.load %arg12[%c0_49, %c128] : memref<32x200xf32, #tpu.memory_space<vmem>>, vector<16x8xf32>
    tpu.vector_store %arg12[%c0_49, %c128], %36 {strides = array<i32>} : memref<32x200xf32, #tpu.memory_space<vmem>>, vector<16x8xf32>,
    %c10_50 = arith.constant 10 : index
    %c0_51 = arith.constant 0 : index
    %38 = vector.load %arg10[%c10_50, %c0_51] : memref<32x8xf32, #tpu.memory_space<vmem>>, vector<16x8xf32>
    %c0_52 = arith.constant 0 : index
    %c136 = arith.constant 136 : index
    %39 = vector.load %arg12[%c0_52, %c136] : memref<32x200xf32, #tpu.memory_space<vmem>>, vector<16x8xf32>
    tpu.vector_store %arg12[%c0_52, %c136], %38 {strides = array<i32>} : memref<32x200xf32, #tpu.memory_space<vmem>>, vector<16x8xf32>,
    %c11 = arith.constant 11 : index
    %c0_53 = arith.constant 0 : index
    %40 = vector.load %arg10[%c11, %c0_53] : memref<32x8xf32, #tpu.memory_space<vmem>>, vector<16x8xf32>
    %c0_54 = arith.constant 0 : index
    %c144 = arith.constant 144 : index
    %41 = vector.load %arg12[%c0_54, %c144] : memref<32x200xf32, #tpu.memory_space<vmem>>, vector<16x8xf32>
    tpu.vector_store %arg12[%c0_54, %c144], %40 {strides = array<i32>} : memref<32x200xf32, #tpu.memory_space<vmem>>, vector<16x8xf32>,
    %c12 = arith.constant 12 : index
    %c0_55 = arith.constant 0 : index
    %42 = vector.load %arg10[%c12, %c0_55] : memref<32x8xf32, #tpu.memory_space<vmem>>, vector<16x8xf32>
    %c0_56 = arith.constant 0 : index
    %c152 = arith.constant 152 : index
    %43 = vector.load %arg12[%c0_56, %c152] : memref<32x200xf32, #tpu.memory_space<vmem>>, vector<16x8xf32>
    tpu.vector_store %arg12[%c0_56, %c152], %42 {strides = array<i32>} : memref<32x200xf32, #tpu.memory_space<vmem>>, vector<16x8xf32>,
    %c10_57 = arith.constant 10 : index
    %c0_58 = arith.constant 0 : index
    %44 = vector.load %arg10[%c10_57, %c0_58] : memref<32x8xf32, #tpu.memory_space<vmem>>, vector<16x8xf32>
    %c0_59 = arith.constant 0 : index
    %c160 = arith.constant 160 : index
    %45 = vector.load %arg12[%c0_59, %c160] : memref<32x200xf32, #tpu.memory_space<vmem>>, vector<16x8xf32>
    tpu.vector_store %arg12[%c0_59, %c160], %44 {strides = array<i32>} : memref<32x200xf32, #tpu.memory_space<vmem>>, vector<16x8xf32>,
    %c11_60 = arith.constant 11 : index
    %c0_61 = arith.constant 0 : index
    %46 = vector.load %arg10[%c11_60, %c0_61] : memref<32x8xf32, #tpu.memory_space<vmem>>, vector<16x8xf32>
    %c0_62 = arith.constant 0 : index
    %c168 = arith.constant 168 : index
    %47 = vector.load %arg12[%c0_62, %c168] : memref<32x200xf32, #tpu.memory_space<vmem>>, vector<16x8xf32>
    tpu.vector_store %arg12[%c0_62, %c168], %46 {strides = array<i32>} : memref<32x200xf32, #tpu.memory_space<vmem>>, vector<16x8xf32>,
    %c12_63 = arith.constant 12 : index
    %c0_64 = arith.constant 0 : index
    %48 = vector.load %arg10[%c12_63, %c0_64] : memref<32x8xf32, #tpu.memory_space<vmem>>, vector<16x8xf32>
    %c0_65 = arith.constant 0 : index
    %c176 = arith.constant 176 : index
    %49 = vector.load %arg12[%c0_65, %c176] : memref<32x200xf32, #tpu.memory_space<vmem>>, vector<16x8xf32>
    tpu.vector_store %arg12[%c0_65, %c176], %48 {strides = array<i32>} : memref<32x200xf32, #tpu.memory_space<vmem>>, vector<16x8xf32>,
    %c13 = arith.constant 13 : index
    %c0_66 = arith.constant 0 : index
    %50 = vector.load %arg10[%c13, %c0_66] : memref<32x8xf32, #tpu.memory_space<vmem>>, vector<16x8xf32>
    %c0_67 = arith.constant 0 : index
    %c184 = arith.constant 184 : index
    %51 = vector.load %arg12[%c0_67, %c184] : memref<32x200xf32, #tpu.memory_space<vmem>>, vector<16x8xf32>
    tpu.vector_store %arg12[%c0_67, %c184], %50 {strides = array<i32>} : memref<32x200xf32, #tpu.memory_space<vmem>>, vector<16x8xf32>,
    %c14 = arith.constant 14 : index
    %c0_68 = arith.constant 0 : index
    %52 = vector.load %arg10[%c14, %c0_68] : memref<32x8xf32, #tpu.memory_space<vmem>>, vector<16x8xf32>
    %c0_69 = arith.constant 0 : index
    %c192 = arith.constant 192 : index
    %53 = vector.load %arg12[%c0_69, %c192] : memref<32x200xf32, #tpu.memory_space<vmem>>, vector<16x8xf32>
    tpu.vector_store %arg12[%c0_69, %c192], %52 {strides = array<i32>} : memref<32x200xf32, #tpu.memory_space<vmem>>, vector<16x8xf32>,
    %c6_70 = arith.constant 6 : index
    %c0_71 = arith.constant 0 : index
    %54 = vector.load %arg11[%c6_70, %c0_71] : memref<64x8xf32, #tpu.memory_space<vmem>>, vector<16x8xf32>
    %c16_72 = arith.constant 16 : index
    %c0_73 = arith.constant 0 : index
    %55 = vector.load %arg12[%c16_72, %c0_73] : memref<32x200xf32, #tpu.memory_space<vmem>>, vector<16x8xf32>
    tpu.vector_store %arg12[%c16_72, %c0_73], %54 {strides = array<i32>} : memref<32x200xf32, #tpu.memory_space<vmem>>, vector<16x8xf32>,
    %c7_74 = arith.constant 7 : index
    %c0_75 = arith.constant 0 : index
    %56 = vector.load %arg11[%c7_74, %c0_75] : memref<64x8xf32, #tpu.memory_space<vmem>>, vector<16x8xf32>
    %c16_76 = arith.constant 16 : index
    %c8_77 = arith.constant 8 : index
    %57 = vector.load %arg12[%c16_76, %c8_77] : memref<32x200xf32, #tpu.memory_space<vmem>>, vector<16x8xf32>
    tpu.vector_store %arg12[%c16_76, %c8_77], %56 {strides = array<i32>} : memref<32x200xf32, #tpu.memory_space<vmem>>, vector<16x8xf32>,
    %c8_78 = arith.constant 8 : index
    %c0_79 = arith.constant 0 : index
    %58 = vector.load %arg11[%c8_78, %c0_79] : memref<64x8xf32, #tpu.memory_space<vmem>>, vector<16x8xf32>
    %c16_80 = arith.constant 16 : index
    %c16_81 = arith.constant 16 : index
    %59 = vector.load %arg12[%c16_80, %c16_81] : memref<32x200xf32, #tpu.memory_space<vmem>>, vector<16x8xf32>
    tpu.vector_store %arg12[%c16_80, %c16_81], %58 {strides = array<i32>} : memref<32x200xf32, #tpu.memory_space<vmem>>, vector<16x8xf32>,
    %c9_82 = arith.constant 9 : index
    %c0_83 = arith.constant 0 : index
    %60 = vector.load %arg11[%c9_82, %c0_83] : memref<64x8xf32, #tpu.memory_space<vmem>>, vector<16x8xf32>
    %c16_84 = arith.constant 16 : index
    %c24_85 = arith.constant 24 : index
    %61 = vector.load %arg12[%c16_84, %c24_85] : memref<32x200xf32, #tpu.memory_space<vmem>>, vector<16x8xf32>
    tpu.vector_store %arg12[%c16_84, %c24_85], %60 {strides = array<i32>} : memref<32x200xf32, #tpu.memory_space<vmem>>, vector<16x8xf32>,
    %c10_86 = arith.constant 10 : index
    %c0_87 = arith.constant 0 : index
    %62 = vector.load %arg11[%c10_86, %c0_87] : memref<64x8xf32, #tpu.memory_space<vmem>>, vector<16x8xf32>
    %c16_88 = arith.constant 16 : index
    %c32_89 = arith.constant 32 : index
    %63 = vector.load %arg12[%c16_88, %c32_89] : memref<32x200xf32, #tpu.memory_space<vmem>>, vector<16x8xf32>
    tpu.vector_store %arg12[%c16_88, %c32_89], %62 {strides = array<i32>} : memref<32x200xf32, #tpu.memory_space<vmem>>, vector<16x8xf32>,
    %c14_90 = arith.constant 14 : index
    %c0_91 = arith.constant 0 : index
    %64 = vector.load %arg11[%c14_90, %c0_91] : memref<64x8xf32, #tpu.memory_space<vmem>>, vector<16x8xf32>
    %c16_92 = arith.constant 16 : index
    %c40_93 = arith.constant 40 : index
    %65 = vector.load %arg12[%c16_92, %c40_93] : memref<32x200xf32, #tpu.memory_space<vmem>>, vector<16x8xf32>
    tpu.vector_store %arg12[%c16_92, %c40_93], %64 {strides = array<i32>} : memref<32x200xf32, #tpu.memory_space<vmem>>, vector<16x8xf32>,
    %c15 = arith.constant 15 : index
    %c0_94 = arith.constant 0 : index
    %66 = vector.load %arg11[%c15, %c0_94] : memref<64x8xf32, #tpu.memory_space<vmem>>, vector<16x8xf32>
    %c16_95 = arith.constant 16 : index
    %c48_96 = arith.constant 48 : index
    %67 = vector.load %arg12[%c16_95, %c48_96] : memref<32x200xf32, #tpu.memory_space<vmem>>, vector<16x8xf32>
    tpu.vector_store %arg12[%c16_95, %c48_96], %66 {strides = array<i32>} : memref<32x200xf32, #tpu.memory_space<vmem>>, vector<16x8xf32>,
    %c16_97 = arith.constant 16 : index
    %c0_98 = arith.constant 0 : index
    %68 = vector.load %arg11[%c16_97, %c0_98] : memref<64x8xf32, #tpu.memory_space<vmem>>, vector<16x8xf32>
    %c16_99 = arith.constant 16 : index
    %c56_100 = arith.constant 56 : index
    %69 = vector.load %arg12[%c16_99, %c56_100] : memref<32x200xf32, #tpu.memory_space<vmem>>, vector<16x8xf32>
    tpu.vector_store %arg12[%c16_99, %c56_100], %68 {strides = array<i32>} : memref<32x200xf32, #tpu.memory_space<vmem>>, vector<16x8xf32>,
    %c17 = arith.constant 17 : index
    %c0_101 = arith.constant 0 : index
    %70 = vector.load %arg11[%c17, %c0_101] : memref<64x8xf32, #tpu.memory_space<vmem>>, vector<16x8xf32>
    %c16_102 = arith.constant 16 : index
    %c64_103 = arith.constant 64 : index
    %71 = vector.load %arg12[%c16_102, %c64_103] : memref<32x200xf32, #tpu.memory_space<vmem>>, vector<16x8xf32>
    tpu.vector_store %arg12[%c16_102, %c64_103], %70 {strides = array<i32>} : memref<32x200xf32, #tpu.memory_space<vmem>>, vector<16x8xf32>,
    %c18 = arith.constant 18 : index
    %c0_104 = arith.constant 0 : index
    %72 = vector.load %arg11[%c18, %c0_104] : memref<64x8xf32, #tpu.memory_space<vmem>>, vector<16x8xf32>
    %c16_105 = arith.constant 16 : index
    %c72_106 = arith.constant 72 : index
    %73 = vector.load %arg12[%c16_105, %c72_106] : memref<32x200xf32, #tpu.memory_space<vmem>>, vector<16x8xf32>
    tpu.vector_store %arg12[%c16_105, %c72_106], %72 {strides = array<i32>} : memref<32x200xf32, #tpu.memory_space<vmem>>, vector<16x8xf32>,
    %c22 = arith.constant 22 : index
    %c0_107 = arith.constant 0 : index
    %74 = vector.load %arg11[%c22, %c0_107] : memref<64x8xf32, #tpu.memory_space<vmem>>, vector<16x8xf32>
    %c16_108 = arith.constant 16 : index
    %c80_109 = arith.constant 80 : index
    %75 = vector.load %arg12[%c16_108, %c80_109] : memref<32x200xf32, #tpu.memory_space<vmem>>, vector<16x8xf32>
    tpu.vector_store %arg12[%c16_108, %c80_109], %74 {strides = array<i32>} : memref<32x200xf32, #tpu.memory_space<vmem>>, vector<16x8xf32>,
    %c23 = arith.constant 23 : index
    %c0_110 = arith.constant 0 : index
    %76 = vector.load %arg11[%c23, %c0_110] : memref<64x8xf32, #tpu.memory_space<vmem>>, vector<16x8xf32>
    %c16_111 = arith.constant 16 : index
    %c88_112 = arith.constant 88 : index
    %77 = vector.load %arg12[%c16_111, %c88_112] : memref<32x200xf32, #tpu.memory_space<vmem>>, vector<16x8xf32>
    tpu.vector_store %arg12[%c16_111, %c88_112], %76 {strides = array<i32>} : memref<32x200xf32, #tpu.memory_space<vmem>>, vector<16x8xf32>,
    %c24_113 = arith.constant 24 : index
    %c0_114 = arith.constant 0 : index
    %78 = vector.load %arg11[%c24_113, %c0_114] : memref<64x8xf32, #tpu.memory_space<vmem>>, vector<16x8xf32>
    %c16_115 = arith.constant 16 : index
    %c96_116 = arith.constant 96 : index
    %79 = vector.load %arg12[%c16_115, %c96_116] : memref<32x200xf32, #tpu.memory_space<vmem>>, vector<16x8xf32>
    tpu.vector_store %arg12[%c16_115, %c96_116], %78 {strides = array<i32>} : memref<32x200xf32, #tpu.memory_space<vmem>>, vector<16x8xf32>,
    %c25 = arith.constant 25 : index
    %c0_117 = arith.constant 0 : index
    %80 = vector.load %arg11[%c25, %c0_117] : memref<64x8xf32, #tpu.memory_space<vmem>>, vector<16x8xf32>
    %c16_118 = arith.constant 16 : index
    %c104_119 = arith.constant 104 : index
    %81 = vector.load %arg12[%c16_118, %c104_119] : memref<32x200xf32, #tpu.memory_space<vmem>>, vector<16x8xf32>
    tpu.vector_store %arg12[%c16_118, %c104_119], %80 {strides = array<i32>} : memref<32x200xf32, #tpu.memory_space<vmem>>, vector<16x8xf32>,
    %c26 = arith.constant 26 : index
    %c0_120 = arith.constant 0 : index
    %82 = vector.load %arg11[%c26, %c0_120] : memref<64x8xf32, #tpu.memory_space<vmem>>, vector<16x8xf32>
    %c16_121 = arith.constant 16 : index
    %c112_122 = arith.constant 112 : index
    %83 = vector.load %arg12[%c16_121, %c112_122] : memref<32x200xf32, #tpu.memory_space<vmem>>, vector<16x8xf32>
    tpu.vector_store %arg12[%c16_121, %c112_122], %82 {strides = array<i32>} : memref<32x200xf32, #tpu.memory_space<vmem>>, vector<16x8xf32>,
    %c30 = arith.constant 30 : index
    %c0_123 = arith.constant 0 : index
    %84 = vector.load %arg11[%c30, %c0_123] : memref<64x8xf32, #tpu.memory_space<vmem>>, vector<16x8xf32>
    %c16_124 = arith.constant 16 : index
    %c120_125 = arith.constant 120 : index
    %85 = vector.load %arg12[%c16_124, %c120_125] : memref<32x200xf32, #tpu.memory_space<vmem>>, vector<16x8xf32>
    tpu.vector_store %arg12[%c16_124, %c120_125], %84 {strides = array<i32>} : memref<32x200xf32, #tpu.memory_space<vmem>>, vector<16x8xf32>,
    %c31 = arith.constant 31 : index
    %c0_126 = arith.constant 0 : index
    %86 = vector.load %arg11[%c31, %c0_126] : memref<64x8xf32, #tpu.memory_space<vmem>>, vector<16x8xf32>
    %c16_127 = arith.constant 16 : index
    %c128_128 = arith.constant 128 : index
    %87 = vector.load %arg12[%c16_127, %c128_128] : memref<32x200xf32, #tpu.memory_space<vmem>>, vector<16x8xf32>
    tpu.vector_store %arg12[%c16_127, %c128_128], %86 {strides = array<i32>} : memref<32x200xf32, #tpu.memory_space<vmem>>, vector<16x8xf32>,
    %c32_129 = arith.constant 32 : index
    %c0_130 = arith.constant 0 : index
    %88 = vector.load %arg11[%c32_129, %c0_130] : memref<64x8xf32, #tpu.memory_space<vmem>>, vector<16x8xf32>
    %c16_131 = arith.constant 16 : index
    %c136_132 = arith.constant 136 : index
    %89 = vector.load %arg12[%c16_131, %c136_132] : memref<32x200xf32, #tpu.memory_space<vmem>>, vector<16x8xf32>
    tpu.vector_store %arg12[%c16_131, %c136_132], %88 {strides = array<i32>} : memref<32x200xf32, #tpu.memory_space<vmem>>, vector<16x8xf32>,
    %c33 = arith.constant 33 : index
    %c0_133 = arith.constant 0 : index
    %90 = vector.load %arg11[%c33, %c0_133] : memref<64x8xf32, #tpu.memory_space<vmem>>, vector<16x8xf32>
    %c16_134 = arith.constant 16 : index
    %c144_135 = arith.constant 144 : index
    %91 = vector.load %arg12[%c16_134, %c144_135] : memref<32x200xf32, #tpu.memory_space<vmem>>, vector<16x8xf32>
    tpu.vector_store %arg12[%c16_134, %c144_135], %90 {strides = array<i32>} : memref<32x200xf32, #tpu.memory_space<vmem>>, vector<16x8xf32>,
    %c34 = arith.constant 34 : index
    %c0_136 = arith.constant 0 : index
    %92 = vector.load %arg11[%c34, %c0_136] : memref<64x8xf32, #tpu.memory_space<vmem>>, vector<16x8xf32>
    %c16_137 = arith.constant 16 : index
    %c152_138 = arith.constant 152 : index
    %93 = vector.load %arg12[%c16_137, %c152_138] : memref<32x200xf32, #tpu.memory_space<vmem>>, vector<16x8xf32>
    tpu.vector_store %arg12[%c16_137, %c152_138], %92 {strides = array<i32>} : memref<32x200xf32, #tpu.memory_space<vmem>>, vector<16x8xf32>,
    %c38 = arith.constant 38 : index
    %c0_139 = arith.constant 0 : index
    %94 = vector.load %arg11[%c38, %c0_139] : memref<64x8xf32, #tpu.memory_space<vmem>>, vector<16x8xf32>
    %c16_140 = arith.constant 16 : index
    %c160_141 = arith.constant 160 : index
    %95 = vector.load %arg12[%c16_140, %c160_141] : memref<32x200xf32, #tpu.memory_space<vmem>>, vector<16x8xf32>
    tpu.vector_store %arg12[%c16_140, %c160_141], %94 {strides = array<i32>} : memref<32x200xf32, #tpu.memory_space<vmem>>, vector<16x8xf32>,
    %c39 = arith.constant 39 : index
    %c0_142 = arith.constant 0 : index
    %96 = vector.load %arg11[%c39, %c0_142] : memref<64x8xf32, #tpu.memory_space<vmem>>, vector<16x8xf32>
    %c16_143 = arith.constant 16 : index
    %c168_144 = arith.constant 168 : index
    %97 = vector.load %arg12[%c16_143, %c168_144] : memref<32x200xf32, #tpu.memory_space<vmem>>, vector<16x8xf32>
    tpu.vector_store %arg12[%c16_143, %c168_144], %96 {strides = array<i32>} : memref<32x200xf32, #tpu.memory_space<vmem>>, vector<16x8xf32>,
    %c40_145 = arith.constant 40 : index
    %c0_146 = arith.constant 0 : index
    %98 = vector.load %arg11[%c40_145, %c0_146] : memref<64x8xf32, #tpu.memory_space<vmem>>, vector<16x8xf32>
    %c16_147 = arith.constant 16 : index
    %c176_148 = arith.constant 176 : index
    %99 = vector.load %arg12[%c16_147, %c176_148] : memref<32x200xf32, #tpu.memory_space<vmem>>, vector<16x8xf32>
    tpu.vector_store %arg12[%c16_147, %c176_148], %98 {strides = array<i32>} : memref<32x200xf32, #tpu.memory_space<vmem>>, vector<16x8xf32>,
    %c41 = arith.constant 41 : index
    %c0_149 = arith.constant 0 : index
    %100 = vector.load %arg11[%c41, %c0_149] : memref<64x8xf32, #tpu.memory_space<vmem>>, vector<16x8xf32>
    %c16_150 = arith.constant 16 : index
    %c184_151 = arith.constant 184 : index
    %101 = vector.load %arg12[%c16_150, %c184_151] : memref<32x200xf32, #tpu.memory_space<vmem>>, vector<16x8xf32>
    tpu.vector_store %arg12[%c16_150, %c184_151], %100 {strides = array<i32>} : memref<32x200xf32, #tpu.memory_space<vmem>>, vector<16x8xf32>,
    %c42 = arith.constant 42 : index
    %c0_152 = arith.constant 0 : index
    %102 = vector.load %arg11[%c42, %c0_152] : memref<64x8xf32, #tpu.memory_space<vmem>>, vector<16x8xf32>
    %c16_153 = arith.constant 16 : index
    %c192_154 = arith.constant 192 : index
    %103 = vector.load %arg12[%c16_153, %c192_154] : memref<32x200xf32, #tpu.memory_space<vmem>>, vector<16x8xf32>
    tpu.vector_store %arg12[%c16_153, %c192_154], %102 {strides = array<i32>} : memref<32x200xf32, #tpu.memory_space<vmem>>, vector<16x8xf32>,
    %c0_155 = arith.constant 0 : index
    %c0_156 = arith.constant 0 : index
    %104 = vector.load %arg12[%c0_155, %c0_156] : memref<32x200xf32, #tpu.memory_space<vmem>>, vector<32x200xf32>
    %c0_157 = arith.constant 0 : index
    %c0_158 = arith.constant 0 : index
    %105 = vector.load %arg7[%c0_157, %c0_158] : memref<32x200xf32, #tpu.memory_space<vmem>>, vector<32x200xf32>
    %cst = arith.constant 5.000000e-01 : f32
    %106 = vector.broadcast %cst : f32 to vector<32x200xf32>
    %107 = arith.cmpf ogt, %105, %106 : vector<32x200xf32>
    %cst_159 = arith.constant 0.000000e+00 : f32
    %108 = vector.broadcast %cst_159 : f32 to vector<32x200xf32>
    %109 = arith.select %107, %104, %108 : vector<32x200xi1>, vector<32x200xf32>
    %110 = arith.truncf %109 : vector<32x200xf32> to vector<32x200xbf16>
    %c0_160 = arith.constant 0 : index
    %c0_161 = arith.constant 0 : index
    %111 = vector.load %arg3[%c0_160, %c0_161] : memref<200x8xbf16, #tpu.memory_space<vmem>>, vector<200x8xbf16>
    %cst_162 = arith.constant dense<0.000000e+00> : vector<32x8xf32>
    %112 = tpu.matmul %110, %111, %cst_162 {dimension_numbers = #tpu.dot_dimension_numbers<[1], [0], [0], [1], [0, 0, 1, 1], [], []>} : vector<32x200xbf16>, vector<200x8xbf16>, vector<32x8xf32> -> vector<32x8xf32>
    %c0_163 = arith.constant 0 : index
    %c0_164 = arith.constant 0 : index
    %113 = vector.load %arg4[%c0_163, %c0_164] : memref<1x8xf32, #tpu.memory_space<vmem>>, vector<1x8xf32>
    %114 = vector.broadcast %113 : vector<1x8xf32> to vector<32x8xf32>
    %115 = arith.addf %112, %114 : vector<32x8xf32>
    %cst_165 = arith.constant 5.000000e-01 : f32
    %116 = vector.broadcast %cst_165 : f32 to vector<32x8xf32>
    %117 = arith.mulf %116, %115 : vector<32x8xf32>
    %cst_166 = arith.constant 4.471500e-02 : f32
    %118 = vector.broadcast %cst_166 : f32 to vector<32x8xf32>
    %119 = arith.mulf %118, %115 : vector<32x8xf32>
    %120 = arith.mulf %119, %115 : vector<32x8xf32>
    %121 = arith.mulf %120, %115 : vector<32x8xf32>
    %122 = arith.addf %115, %121 : vector<32x8xf32>
    %cst_167 = arith.constant 0.797884583 : f32
    %123 = vector.broadcast %cst_167 : f32 to vector<32x8xf32>
    %124 = arith.mulf %123, %122 : vector<32x8xf32>
    %125 = math.tanh %124 : vector<32x8xf32>
    %cst_168 = arith.constant 1.000000e+00 : f32
    %126 = vector.broadcast %cst_168 : f32 to vector<32x8xf32>
    %127 = arith.addf %126, %125 : vector<32x8xf32>
    %128 = arith.mulf %117, %127 : vector<32x8xf32>
    %129 = vector.extract_strided_slice %128 {offsets = [0, 0], sizes = [16, 8], strides = [1, 1]} : vector<32x8xf32> to vector<16x8xf32>
    %c8_169 = arith.constant 8 : index
    %c0_170 = arith.constant 0 : index
    %130 = vector.load %arg10[%c8_169, %c0_170] : memref<32x8xf32, #tpu.memory_space<vmem>>, vector<16x8xf32>
    tpu.vector_store %arg10[%c8_169, %c0_170], %129 {strides = array<i32>} : memref<32x8xf32, #tpu.memory_space<vmem>>, vector<16x8xf32>,
    %131 = vector.extract_strided_slice %128 {offsets = [16, 0], sizes = [16, 8], strides = [1, 1]} : vector<32x8xf32> to vector<16x8xf32>
    %c24_171 = arith.constant 24 : index
    %c0_172 = arith.constant 0 : index
    %132 = vector.load %arg11[%c24_171, %c0_172] : memref<64x8xf32, #tpu.memory_space<vmem>>, vector<16x8xf32>
    tpu.vector_store %arg11[%c24_171, %c0_172], %131 {strides = array<i32>} : memref<64x8xf32, #tpu.memory_space<vmem>>, vector<16x8xf32>,
    %c2_173 = arith.constant 2 : index
    %c0_174 = arith.constant 0 : index
    %133 = vector.load %arg10[%c2_173, %c0_174] : memref<32x8xf32, #tpu.memory_space<vmem>>, vector<16x8xf32>
    %c0_175 = arith.constant 0 : index
    %c0_176 = arith.constant 0 : index
    %134 = vector.load %arg12[%c0_175, %c0_176] : memref<32x200xf32, #tpu.memory_space<vmem>>, vector<16x8xf32>
    tpu.vector_store %arg12[%c0_175, %c0_176], %133 {strides = array<i32>} : memref<32x200xf32, #tpu.memory_space<vmem>>, vector<16x8xf32>,
    %c3_177 = arith.constant 3 : index
    %c0_178 = arith.constant 0 : index
    %135 = vector.load %arg10[%c3_177, %c0_178] : memref<32x8xf32, #tpu.memory_space<vmem>>, vector<16x8xf32>
    %c0_179 = arith.constant 0 : index
    %c8_180 = arith.constant 8 : index
    %136 = vector.load %arg12[%c0_179, %c8_180] : memref<32x200xf32, #tpu.memory_space<vmem>>, vector<16x8xf32>
    tpu.vector_store %arg12[%c0_179, %c8_180], %135 {strides = array<i32>} : memref<32x200xf32, #tpu.memory_space<vmem>>, vector<16x8xf32>,
    %c4_181 = arith.constant 4 : index
    %c0_182 = arith.constant 0 : index
    %137 = vector.load %arg10[%c4_181, %c0_182] : memref<32x8xf32, #tpu.memory_space<vmem>>, vector<16x8xf32>
    %c0_183 = arith.constant 0 : index
    %c16_184 = arith.constant 16 : index
    %138 = vector.load %arg12[%c0_183, %c16_184] : memref<32x200xf32, #tpu.memory_space<vmem>>, vector<16x8xf32>
    tpu.vector_store %arg12[%c0_183, %c16_184], %137 {strides = array<i32>} : memref<32x200xf32, #tpu.memory_space<vmem>>, vector<16x8xf32>,
    %c5_185 = arith.constant 5 : index
    %c0_186 = arith.constant 0 : index
    %139 = vector.load %arg10[%c5_185, %c0_186] : memref<32x8xf32, #tpu.memory_space<vmem>>, vector<16x8xf32>
    %c0_187 = arith.constant 0 : index
    %c24_188 = arith.constant 24 : index
    %140 = vector.load %arg12[%c0_187, %c24_188] : memref<32x200xf32, #tpu.memory_space<vmem>>, vector<16x8xf32>
    tpu.vector_store %arg12[%c0_187, %c24_188], %139 {strides = array<i32>} : memref<32x200xf32, #tpu.memory_space<vmem>>, vector<16x8xf32>,
    %c6_189 = arith.constant 6 : index
    %c0_190 = arith.constant 0 : index
    %141 = vector.load %arg10[%c6_189, %c0_190] : memref<32x8xf32, #tpu.memory_space<vmem>>, vector<16x8xf32>
    %c0_191 = arith.constant 0 : index
    %c32_192 = arith.constant 32 : index
    %142 = vector.load %arg12[%c0_191, %c32_192] : memref<32x200xf32, #tpu.memory_space<vmem>>, vector<16x8xf32>
    tpu.vector_store %arg12[%c0_191, %c32_192], %141 {strides = array<i32>} : memref<32x200xf32, #tpu.memory_space<vmem>>, vector<16x8xf32>,
    %c4_193 = arith.constant 4 : index
    %c0_194 = arith.constant 0 : index
    %143 = vector.load %arg10[%c4_193, %c0_194] : memref<32x8xf32, #tpu.memory_space<vmem>>, vector<16x8xf32>
    %c0_195 = arith.constant 0 : index
    %c40_196 = arith.constant 40 : index
    %144 = vector.load %arg12[%c0_195, %c40_196] : memref<32x200xf32, #tpu.memory_space<vmem>>, vector<16x8xf32>
    tpu.vector_store %arg12[%c0_195, %c40_196], %143 {strides = array<i32>} : memref<32x200xf32, #tpu.memory_space<vmem>>, vector<16x8xf32>,
    %c5_197 = arith.constant 5 : index
    %c0_198 = arith.constant 0 : index
    %145 = vector.load %arg10[%c5_197, %c0_198] : memref<32x8xf32, #tpu.memory_space<vmem>>, vector<16x8xf32>
    %c0_199 = arith.constant 0 : index
    %c48_200 = arith.constant 48 : index
    %146 = vector.load %arg12[%c0_199, %c48_200] : memref<32x200xf32, #tpu.memory_space<vmem>>, vector<16x8xf32>
    tpu.vector_store %arg12[%c0_199, %c48_200], %145 {strides = array<i32>} : memref<32x200xf32, #tpu.memory_space<vmem>>, vector<16x8xf32>,
    %c6_201 = arith.constant 6 : index
    %c0_202 = arith.constant 0 : index
    %147 = vector.load %arg10[%c6_201, %c0_202] : memref<32x8xf32, #tpu.memory_space<vmem>>, vector<16x8xf32>
    %c0_203 = arith.constant 0 : index
    %c56_204 = arith.constant 56 : index
    %148 = vector.load %arg12[%c0_203, %c56_204] : memref<32x200xf32, #tpu.memory_space<vmem>>, vector<16x8xf32>
    tpu.vector_store %arg12[%c0_203, %c56_204], %147 {strides = array<i32>} : memref<32x200xf32, #tpu.memory_space<vmem>>, vector<16x8xf32>,
    %c7_205 = arith.constant 7 : index
    %c0_206 = arith.constant 0 : index
    %149 = vector.load %arg10[%c7_205, %c0_206] : memref<32x8xf32, #tpu.memory_space<vmem>>, vector<16x8xf32>
    %c0_207 = arith.constant 0 : index
    %c64_208 = arith.constant 64 : index
    %150 = vector.load %arg12[%c0_207, %c64_208] : memref<32x200xf32, #tpu.memory_space<vmem>>, vector<16x8xf32>
    tpu.vector_store %arg12[%c0_207, %c64_208], %149 {strides = array<i32>} : memref<32x200xf32, #tpu.memory_space<vmem>>, vector<16x8xf32>,
    %c8_209 = arith.constant 8 : index
    %c0_210 = arith.constant 0 : index
    %151 = vector.load %arg10[%c8_209, %c0_210] : memref<32x8xf32, #tpu.memory_space<vmem>>, vector<16x8xf32>
    %c0_211 = arith.constant 0 : index
    %c72_212 = arith.constant 72 : index
    %152 = vector.load %arg12[%c0_211, %c72_212] : memref<32x200xf32, #tpu.memory_space<vmem>>, vector<16x8xf32>
    tpu.vector_store %arg12[%c0_211, %c72_212], %151 {strides = array<i32>} : memref<32x200xf32, #tpu.memory_space<vmem>>, vector<16x8xf32>,
    %c6_213 = arith.constant 6 : index
    %c0_214 = arith.constant 0 : index
    %153 = vector.load %arg10[%c6_213, %c0_214] : memref<32x8xf32, #tpu.memory_space<vmem>>, vector<16x8xf32>
    %c0_215 = arith.constant 0 : index
    %c80_216 = arith.constant 80 : index
    %154 = vector.load %arg12[%c0_215, %c80_216] : memref<32x200xf32, #tpu.memory_space<vmem>>, vector<16x8xf32>
    tpu.vector_store %arg12[%c0_215, %c80_216], %153 {strides = array<i32>} : memref<32x200xf32, #tpu.memory_space<vmem>>, vector<16x8xf32>,
    %c7_217 = arith.constant 7 : index
    %c0_218 = arith.constant 0 : index
    %155 = vector.load %arg10[%c7_217, %c0_218] : memref<32x8xf32, #tpu.memory_space<vmem>>, vector<16x8xf32>
    %c0_219 = arith.constant 0 : index
    %c88_220 = arith.constant 88 : index
    %156 = vector.load %arg12[%c0_219, %c88_220] : memref<32x200xf32, #tpu.memory_space<vmem>>, vector<16x8xf32>
    tpu.vector_store %arg12[%c0_219, %c88_220], %155 {strides = array<i32>} : memref<32x200xf32, #tpu.memory_space<vmem>>, vector<16x8xf32>,
    %c8_221 = arith.constant 8 : index
    %c0_222 = arith.constant 0 : index
    %157 = vector.load %arg10[%c8_221, %c0_222] : memref<32x8xf32, #tpu.memory_space<vmem>>, vector<16x8xf32>
    %c0_223 = arith.constant 0 : index
    %c96_224 = arith.constant 96 : index
    %158 = vector.load %arg12[%c0_223, %c96_224] : memref<32x200xf32, #tpu.memory_space<vmem>>, vector<16x8xf32>
    tpu.vector_store %arg12[%c0_223, %c96_224], %157 {strides = array<i32>} : memref<32x200xf32, #tpu.memory_space<vmem>>, vector<16x8xf32>,
    %c9_225 = arith.constant 9 : index
    %c0_226 = arith.constant 0 : index
    %159 = vector.load %arg10[%c9_225, %c0_226] : memref<32x8xf32, #tpu.memory_space<vmem>>, vector<16x8xf32>
    %c0_227 = arith.constant 0 : index
    %c104_228 = arith.constant 104 : index
    %160 = vector.load %arg12[%c0_227, %c104_228] : memref<32x200xf32, #tpu.memory_space<vmem>>, vector<16x8xf32>
    tpu.vector_store %arg12[%c0_227, %c104_228], %159 {strides = array<i32>} : memref<32x200xf32, #tpu.memory_space<vmem>>, vector<16x8xf32>,
    %c10_229 = arith.constant 10 : index
    %c0_230 = arith.constant 0 : index
    %161 = vector.load %arg10[%c10_229, %c0_230] : memref<32x8xf32, #tpu.memory_space<vmem>>, vector<16x8xf32>
    %c0_231 = arith.constant 0 : index
    %c112_232 = arith.constant 112 : index
    %162 = vector.load %arg12[%c0_231, %c112_232] : memref<32x200xf32, #tpu.memory_space<vmem>>, vector<16x8xf32>
    tpu.vector_store %arg12[%c0_231, %c112_232], %161 {strides = array<i32>} : memref<32x200xf32, #tpu.memory_space<vmem>>, vector<16x8xf32>,
    %c8_233 = arith.constant 8 : index
    %c0_234 = arith.constant 0 : index
    %163 = vector.load %arg10[%c8_233, %c0_234] : memref<32x8xf32, #tpu.memory_space<vmem>>, vector<16x8xf32>
    %c0_235 = arith.constant 0 : index
    %c120_236 = arith.constant 120 : index
    %164 = vector.load %arg12[%c0_235, %c120_236] : memref<32x200xf32, #tpu.memory_space<vmem>>, vector<16x8xf32>
    tpu.vector_store %arg12[%c0_235, %c120_236], %163 {strides = array<i32>} : memref<32x200xf32, #tpu.memory_space<vmem>>, vector<16x8xf32>,
    %c9_237 = arith.constant 9 : index
    %c0_238 = arith.constant 0 : index
    %165 = vector.load %arg10[%c9_237, %c0_238] : memref<32x8xf32, #tpu.memory_space<vmem>>, vector<16x8xf32>
    %c0_239 = arith.constant 0 : index
    %c128_240 = arith.constant 128 : index
    %166 = vector.load %arg12[%c0_239, %c128_240] : memref<32x200xf32, #tpu.memory_space<vmem>>, vector<16x8xf32>
    tpu.vector_store %arg12[%c0_239, %c128_240], %165 {strides = array<i32>} : memref<32x200xf32, #tpu.memory_space<vmem>>, vector<16x8xf32>,
    %c10_241 = arith.constant 10 : index
    %c0_242 = arith.constant 0 : index
    %167 = vector.load %arg10[%c10_241, %c0_242] : memref<32x8xf32, #tpu.memory_space<vmem>>, vector<16x8xf32>
    %c0_243 = arith.constant 0 : index
    %c136_244 = arith.constant 136 : index
    %168 = vector.load %arg12[%c0_243, %c136_244] : memref<32x200xf32, #tpu.memory_space<vmem>>, vector<16x8xf32>
    tpu.vector_store %arg12[%c0_243, %c136_244], %167 {strides = array<i32>} : memref<32x200xf32, #tpu.memory_space<vmem>>, vector<16x8xf32>,
    %c11_245 = arith.constant 11 : index
    %c0_246 = arith.constant 0 : index
    %169 = vector.load %arg10[%c11_245, %c0_246] : memref<32x8xf32, #tpu.memory_space<vmem>>, vector<16x8xf32>
    %c0_247 = arith.constant 0 : index
    %c144_248 = arith.constant 144 : index
    %170 = vector.load %arg12[%c0_247, %c144_248] : memref<32x200xf32, #tpu.memory_space<vmem>>, vector<16x8xf32>
    tpu.vector_store %arg12[%c0_247, %c144_248], %169 {strides = array<i32>} : memref<32x200xf32, #tpu.memory_space<vmem>>, vector<16x8xf32>,
    %c12_249 = arith.constant 12 : index
    %c0_250 = arith.constant 0 : index
    %171 = vector.load %arg10[%c12_249, %c0_250] : memref<32x8xf32, #tpu.memory_space<vmem>>, vector<16x8xf32>
    %c0_251 = arith.constant 0 : index
    %c152_252 = arith.constant 152 : index
    %172 = vector.load %arg12[%c0_251, %c152_252] : memref<32x200xf32, #tpu.memory_space<vmem>>, vector<16x8xf32>
    tpu.vector_store %arg12[%c0_251, %c152_252], %171 {strides = array<i32>} : memref<32x200xf32, #tpu.memory_space<vmem>>, vector<16x8xf32>,
    %c10_253 = arith.constant 10 : index
    %c0_254 = arith.constant 0 : index
    %173 = vector.load %arg10[%c10_253, %c0_254] : memref<32x8xf32, #tpu.memory_space<vmem>>, vector<16x8xf32>
    %c0_255 = arith.constant 0 : index
    %c160_256 = arith.constant 160 : index
    %174 = vector.load %arg12[%c0_255, %c160_256] : memref<32x200xf32, #tpu.memory_space<vmem>>, vector<16x8xf32>
    tpu.vector_store %arg12[%c0_255, %c160_256], %173 {strides = array<i32>} : memref<32x200xf32, #tpu.memory_space<vmem>>, vector<16x8xf32>,
    %c11_257 = arith.constant 11 : index
    %c0_258 = arith.constant 0 : index
    %175 = vector.load %arg10[%c11_257, %c0_258] : memref<32x8xf32, #tpu.memory_space<vmem>>, vector<16x8xf32>
    %c0_259 = arith.constant 0 : index
    %c168_260 = arith.constant 168 : index
    %176 = vector.load %arg12[%c0_259, %c168_260] : memref<32x200xf32, #tpu.memory_space<vmem>>, vector<16x8xf32>
    tpu.vector_store %arg12[%c0_259, %c168_260], %175 {strides = array<i32>} : memref<32x200xf32, #tpu.memory_space<vmem>>, vector<16x8xf32>,
    %c12_261 = arith.constant 12 : index
    %c0_262 = arith.constant 0 : index
    %177 = vector.load %arg10[%c12_261, %c0_262] : memref<32x8xf32, #tpu.memory_space<vmem>>, vector<16x8xf32>
    %c0_263 = arith.constant 0 : index
    %c176_264 = arith.constant 176 : index
    %178 = vector.load %arg12[%c0_263, %c176_264] : memref<32x200xf32, #tpu.memory_space<vmem>>, vector<16x8xf32>
    tpu.vector_store %arg12[%c0_263, %c176_264], %177 {strides = array<i32>} : memref<32x200xf32, #tpu.memory_space<vmem>>, vector<16x8xf32>,
    %c13_265 = arith.constant 13 : index
    %c0_266 = arith.constant 0 : index
    %179 = vector.load %arg10[%c13_265, %c0_266] : memref<32x8xf32, #tpu.memory_space<vmem>>, vector<16x8xf32>
    %c0_267 = arith.constant 0 : index
    %c184_268 = arith.constant 184 : index
    %180 = vector.load %arg12[%c0_267, %c184_268] : memref<32x200xf32, #tpu.memory_space<vmem>>, vector<16x8xf32>
    tpu.vector_store %arg12[%c0_267, %c184_268], %179 {strides = array<i32>} : memref<32x200xf32, #tpu.memory_space<vmem>>, vector<16x8xf32>,
    %c14_269 = arith.constant 14 : index
    %c0_270 = arith.constant 0 : index
    %181 = vector.load %arg10[%c14_269, %c0_270] : memref<32x8xf32, #tpu.memory_space<vmem>>, vector<16x8xf32>
    %c0_271 = arith.constant 0 : index
    %c192_272 = arith.constant 192 : index
    %182 = vector.load %arg12[%c0_271, %c192_272] : memref<32x200xf32, #tpu.memory_space<vmem>>, vector<16x8xf32>
    tpu.vector_store %arg12[%c0_271, %c192_272], %181 {strides = array<i32>} : memref<32x200xf32, #tpu.memory_space<vmem>>, vector<16x8xf32>,
    %c6_273 = arith.constant 6 : index
    %c0_274 = arith.constant 0 : index
    %183 = vector.load %arg11[%c6_273, %c0_274] : memref<64x8xf32, #tpu.memory_space<vmem>>, vector<16x8xf32>
    %c16_275 = arith.constant 16 : index
    %c0_276 = arith.constant 0 : index
    %184 = vector.load %arg12[%c16_275, %c0_276] : memref<32x200xf32, #tpu.memory_space<vmem>>, vector<16x8xf32>
    tpu.vector_store %arg12[%c16_275, %c0_276], %183 {strides = array<i32>} : memref<32x200xf32, #tpu.memory_space<vmem>>, vector<16x8xf32>,
    %c7_277 = arith.constant 7 : index
    %c0_278 = arith.constant 0 : index
    %185 = vector.load %arg11[%c7_277, %c0_278] : memref<64x8xf32, #tpu.memory_space<vmem>>, vector<16x8xf32>
    %c16_279 = arith.constant 16 : index
    %c8_280 = arith.constant 8 : index
    %186 = vector.load %arg12[%c16_279, %c8_280] : memref<32x200xf32, #tpu.memory_space<vmem>>, vector<16x8xf32>
    tpu.vector_store %arg12[%c16_279, %c8_280], %185 {strides = array<i32>} : memref<32x200xf32, #tpu.memory_space<vmem>>, vector<16x8xf32>,
    %c8_281 = arith.constant 8 : index
    %c0_282 = arith.constant 0 : index
    %187 = vector.load %arg11[%c8_281, %c0_282] : memref<64x8xf32, #tpu.memory_space<vmem>>, vector<16x8xf32>
    %c16_283 = arith.constant 16 : index
    %c16_284 = arith.constant 16 : index
    %188 = vector.load %arg12[%c16_283, %c16_284] : memref<32x200xf32, #tpu.memory_space<vmem>>, vector<16x8xf32>
    tpu.vector_store %arg12[%c16_283, %c16_284], %187 {strides = array<i32>} : memref<32x200xf32, #tpu.memory_space<vmem>>, vector<16x8xf32>,
    %c9_285 = arith.constant 9 : index
    %c0_286 = arith.constant 0 : index
    %189 = vector.load %arg11[%c9_285, %c0_286] : memref<64x8xf32, #tpu.memory_space<vmem>>, vector<16x8xf32>
    %c16_287 = arith.constant 16 : index
    %c24_288 = arith.constant 24 : index
    %190 = vector.load %arg12[%c16_287, %c24_288] : memref<32x200xf32, #tpu.memory_space<vmem>>, vector<16x8xf32>
    tpu.vector_store %arg12[%c16_287, %c24_288], %189 {strides = array<i32>} : memref<32x200xf32, #tpu.memory_space<vmem>>, vector<16x8xf32>,
    %c10_289 = arith.constant 10 : index
    %c0_290 = arith.constant 0 : index
    %191 = vector.load %arg11[%c10_289, %c0_290] : memref<64x8xf32, #tpu.memory_space<vmem>>, vector<16x8xf32>
    %c16_291 = arith.constant 16 : index
    %c32_292 = arith.constant 32 : index
    %192 = vector.load %arg12[%c16_291, %c32_292] : memref<32x200xf32, #tpu.memory_space<vmem>>, vector<16x8xf32>
    tpu.vector_store %arg12[%c16_291, %c32_292], %191 {strides = array<i32>} : memref<32x200xf32, #tpu.memory_space<vmem>>, vector<16x8xf32>,
    %c14_293 = arith.constant 14 : index
    %c0_294 = arith.constant 0 : index
    %193 = vector.load %arg11[%c14_293, %c0_294] : memref<64x8xf32, #tpu.memory_space<vmem>>, vector<16x8xf32>
    %c16_295 = arith.constant 16 : index
    %c40_296 = arith.constant 40 : index
    %194 = vector.load %arg12[%c16_295, %c40_296] : memref<32x200xf32, #tpu.memory_space<vmem>>, vector<16x8xf32>
    tpu.vector_store %arg12[%c16_295, %c40_296], %193 {strides = array<i32>} : memref<32x200xf32, #tpu.memory_space<vmem>>, vector<16x8xf32>,
    %c15_297 = arith.constant 15 : index
    %c0_298 = arith.constant 0 : index
    %195 = vector.load %arg11[%c15_297, %c0_298] : memref<64x8xf32, #tpu.memory_space<vmem>>, vector<16x8xf32>
    %c16_299 = arith.constant 16 : index
    %c48_300 = arith.constant 48 : index
    %196 = vector.load %arg12[%c16_299, %c48_300] : memref<32x200xf32, #tpu.memory_space<vmem>>, vector<16x8xf32>
    tpu.vector_store %arg12[%c16_299, %c48_300], %195 {strides = array<i32>} : memref<32x200xf32, #tpu.memory_space<vmem>>, vector<16x8xf32>,
    %c16_301 = arith.constant 16 : index
    %c0_302 = arith.constant 0 : index
    %197 = vector.load %arg11[%c16_301, %c0_302] : memref<64x8xf32, #tpu.memory_space<vmem>>, vector<16x8xf32>
    %c16_303 = arith.constant 16 : index
    %c56_304 = arith.constant 56 : index
    %198 = vector.load %arg12[%c16_303, %c56_304] : memref<32x200xf32, #tpu.memory_space<vmem>>, vector<16x8xf32>
    tpu.vector_store %arg12[%c16_303, %c56_304], %197 {strides = array<i32>} : memref<32x200xf32, #tpu.memory_space<vmem>>, vector<16x8xf32>,
    %c17_305 = arith.constant 17 : index
    %c0_306 = arith.constant 0 : index
    %199 = vector.load %arg11[%c17_305, %c0_306] : memref<64x8xf32, #tpu.memory_space<vmem>>, vector<16x8xf32>
    %c16_307 = arith.constant 16 : index
    %c64_308 = arith.constant 64 : index
    %200 = vector.load %arg12[%c16_307, %c64_308] : memref<32x200xf32, #tpu.memory_space<vmem>>, vector<16x8xf32>
    tpu.vector_store %arg12[%c16_307, %c64_308], %199 {strides = array<i32>} : memref<32x200xf32, #tpu.memory_space<vmem>>, vector<16x8xf32>,
    %c18_309 = arith.constant 18 : index
    %c0_310 = arith.constant 0 : index
    %201 = vector.load %arg11[%c18_309, %c0_310] : memref<64x8xf32, #tpu.memory_space<vmem>>, vector<16x8xf32>
    %c16_311 = arith.constant 16 : index
    %c72_312 = arith.constant 72 : index
    %202 = vector.load %arg12[%c16_311, %c72_312] : memref<32x200xf32, #tpu.memory_space<vmem>>, vector<16x8xf32>
    tpu.vector_store %arg12[%c16_311, %c72_312], %201 {strides = array<i32>} : memref<32x200xf32, #tpu.memory_space<vmem>>, vector<16x8xf32>,
    %c22_313 = arith.constant 22 : index
    %c0_314 = arith.constant 0 : index
    %203 = vector.load %arg11[%c22_313, %c0_314] : memref<64x8xf32, #tpu.memory_space<vmem>>, vector<16x8xf32>
    %c16_315 = arith.constant 16 : index
    %c80_316 = arith.constant 80 : index
    %204 = vector.load %arg12[%c16_315, %c80_316] : memref<32x200xf32, #tpu.memory_space<vmem>>, vector<16x8xf32>
    tpu.vector_store %arg12[%c16_315, %c80_316], %203 {strides = array<i32>} : memref<32x200xf32, #tpu.memory_space<vmem>>, vector<16x8xf32>,
    %c23_317 = arith.constant 23 : index
    %c0_318 = arith.constant 0 : index
    %205 = vector.load %arg11[%c23_317, %c0_318] : memref<64x8xf32, #tpu.memory_space<vmem>>, vector<16x8xf32>
    %c16_319 = arith.constant 16 : index
    %c88_320 = arith.constant 88 : index
    %206 = vector.load %arg12[%c16_319, %c88_320] : memref<32x200xf32, #tpu.memory_space<vmem>>, vector<16x8xf32>
    tpu.vector_store %arg12[%c16_319, %c88_320], %205 {strides = array<i32>} : memref<32x200xf32, #tpu.memory_space<vmem>>, vector<16x8xf32>,
    %c24_321 = arith.constant 24 : index
    %c0_322 = arith.constant 0 : index
    %207 = vector.load %arg11[%c24_321, %c0_322] : memref<64x8xf32, #tpu.memory_space<vmem>>, vector<16x8xf32>
    %c16_323 = arith.constant 16 : index
    %c96_324 = arith.constant 96 : index
    %208 = vector.load %arg12[%c16_323, %c96_324] : memref<32x200xf32, #tpu.memory_space<vmem>>, vector<16x8xf32>
    tpu.vector_store %arg12[%c16_323, %c96_324], %207 {strides = array<i32>} : memref<32x200xf32, #tpu.memory_space<vmem>>, vector<16x8xf32>,
    %c25_325 = arith.constant 25 : index
    %c0_326 = arith.constant 0 : index
    %209 = vector.load %arg11[%c25_325, %c0_326] : memref<64x8xf32, #tpu.memory_space<vmem>>, vector<16x8xf32>
    %c16_327 = arith.constant 16 : index
    %c104_328 = arith.constant 104 : index
    %210 = vector.load %arg12[%c16_327, %c104_328] : memref<32x200xf32, #tpu.memory_space<vmem>>, vector<16x8xf32>
    tpu.vector_store %arg12[%c16_327, %c104_328], %209 {strides = array<i32>} : memref<32x200xf32, #tpu.memory_space<vmem>>, vector<16x8xf32>,
    %c26_329 = arith.constant 26 : index
    %c0_330 = arith.constant 0 : index
    %211 = vector.load %arg11[%c26_329, %c0_330] : memref<64x8xf32, #tpu.memory_space<vmem>>, vector<16x8xf32>
    %c16_331 = arith.constant 16 : index
    %c112_332 = arith.constant 112 : index
    %212 = vector.load %arg12[%c16_331, %c112_332] : memref<32x200xf32, #tpu.memory_space<vmem>>, vector<16x8xf32>
    tpu.vector_store %arg12[%c16_331, %c112_332], %211 {strides = array<i32>} : memref<32x200xf32, #tpu.memory_space<vmem>>, vector<16x8xf32>,
    %c30_333 = arith.constant 30 : index
    %c0_334 = arith.constant 0 : index
    %213 = vector.load %arg11[%c30_333, %c0_334] : memref<64x8xf32, #tpu.memory_space<vmem>>, vector<16x8xf32>
    %c16_335 = arith.constant 16 : index
    %c120_336 = arith.constant 120 : index
    %214 = vector.load %arg12[%c16_335, %c120_336] : memref<32x200xf32, #tpu.memory_space<vmem>>, vector<16x8xf32>
    tpu.vector_store %arg12[%c16_335, %c120_336], %213 {strides = array<i32>} : memref<32x200xf32, #tpu.memory_space<vmem>>, vector<16x8xf32>,
    %c31_337 = arith.constant 31 : index
    %c0_338 = arith.constant 0 : index
    %215 = vector.load %arg11[%c31_337, %c0_338] : memref<64x8xf32, #tpu.memory_space<vmem>>, vector<16x8xf32>
    %c16_339 = arith.constant 16 : index
    %c128_340 = arith.constant 128 : index
    %216 = vector.load %arg12[%c16_339, %c128_340] : memref<32x200xf32, #tpu.memory_space<vmem>>, vector<16x8xf32>
    tpu.vector_store %arg12[%c16_339, %c128_340], %215 {strides = array<i32>} : memref<32x200xf32, #tpu.memory_space<vmem>>, vector<16x8xf32>,
    %c32_341 = arith.constant 32 : index
    %c0_342 = arith.constant 0 : index
    %217 = vector.load %arg11[%c32_341, %c0_342] : memref<64x8xf32, #tpu.memory_space<vmem>>, vector<16x8xf32>
    %c16_343 = arith.constant 16 : index
    %c136_344 = arith.constant 136 : index
    %218 = vector.load %arg12[%c16_343, %c136_344] : memref<32x200xf32, #tpu.memory_space<vmem>>, vector<16x8xf32>
    tpu.vector_store %arg12[%c16_343, %c136_344], %217 {strides = array<i32>} : memref<32x200xf32, #tpu.memory_space<vmem>>, vector<16x8xf32>,
    %c33_345 = arith.constant 33 : index
    %c0_346 = arith.constant 0 : index
    %219 = vector.load %arg11[%c33_345, %c0_346] : memref<64x8xf32, #tpu.memory_space<vmem>>, vector<16x8xf32>
    %c16_347 = arith.constant 16 : index
    %c144_348 = arith.constant 144 : index
    %220 = vector.load %arg12[%c16_347, %c144_348] : memref<32x200xf32, #tpu.memory_space<vmem>>, vector<16x8xf32>
    tpu.vector_store %arg12[%c16_347, %c144_348], %219 {strides = array<i32>} : memref<32x200xf32, #tpu.memory_space<vmem>>, vector<16x8xf32>,
    %c34_349 = arith.constant 34 : index
    %c0_350 = arith.constant 0 : index
    %221 = vector.load %arg11[%c34_349, %c0_350] : memref<64x8xf32, #tpu.memory_space<vmem>>, vector<16x8xf32>
    %c16_351 = arith.constant 16 : index
    %c152_352 = arith.constant 152 : index
    %222 = vector.load %arg12[%c16_351, %c152_352] : memref<32x200xf32, #tpu.memory_space<vmem>>, vector<16x8xf32>
    tpu.vector_store %arg12[%c16_351, %c152_352], %221 {strides = array<i32>} : memref<32x200xf32, #tpu.memory_space<vmem>>, vector<16x8xf32>,
    %c38_353 = arith.constant 38 : index
    %c0_354 = arith.constant 0 : index
    %223 = vector.load %arg11[%c38_353, %c0_354] : memref<64x8xf32, #tpu.memory_space<vmem>>, vector<16x8xf32>
    %c16_355 = arith.constant 16 : index
    %c160_356 = arith.constant 160 : index
    %224 = vector.load %arg12[%c16_355, %c160_356] : memref<32x200xf32, #tpu.memory_space<vmem>>, vector<16x8xf32>
    tpu.vector_store %arg12[%c16_355, %c160_356], %223 {strides = array<i32>} : memref<32x200xf32, #tpu.memory_space<vmem>>, vector<16x8xf32>,
    %c39_357 = arith.constant 39 : index
    %c0_358 = arith.constant 0 : index
    %225 = vector.load %arg11[%c39_357, %c0_358] : memref<64x8xf32, #tpu.memory_space<vmem>>, vector<16x8xf32>
    %c16_359 = arith.constant 16 : index
    %c168_360 = arith.constant 168 : index
    %226 = vector.load %arg12[%c16_359, %c168_360] : memref<32x200xf32, #tpu.memory_space<vmem>>, vector<16x8xf32>
    tpu.vector_store %arg12[%c16_359, %c168_360], %225 {strides = array<i32>} : memref<32x200xf32, #tpu.memory_space<vmem>>, vector<16x8xf32>,
    %c40_361 = arith.constant 40 : index
    %c0_362 = arith.constant 0 : index
    %227 = vector.load %arg11[%c40_361, %c0_362] : memref<64x8xf32, #tpu.memory_space<vmem>>, vector<16x8xf32>
    %c16_363 = arith.constant 16 : index
    %c176_364 = arith.constant 176 : index
    %228 = vector.load %arg12[%c16_363, %c176_364] : memref<32x200xf32, #tpu.memory_space<vmem>>, vector<16x8xf32>
    tpu.vector_store %arg12[%c16_363, %c176_364], %227 {strides = array<i32>} : memref<32x200xf32, #tpu.memory_space<vmem>>, vector<16x8xf32>,
    %c41_365 = arith.constant 41 : index
    %c0_366 = arith.constant 0 : index
    %229 = vector.load %arg11[%c41_365, %c0_366] : memref<64x8xf32, #tpu.memory_space<vmem>>, vector<16x8xf32>
    %c16_367 = arith.constant 16 : index
    %c184_368 = arith.constant 184 : index
    %230 = vector.load %arg12[%c16_367, %c184_368] : memref<32x200xf32, #tpu.memory_space<vmem>>, vector<16x8xf32>
    tpu.vector_store %arg12[%c16_367, %c184_368], %229 {strides = array<i32>} : memref<32x200xf32, #tpu.memory_space<vmem>>, vector<16x8xf32>,
    %c42_369 = arith.constant 42 : index
    %c0_370 = arith.constant 0 : index
    %231 = vector.load %arg11[%c42_369, %c0_370] : memref<64x8xf32, #tpu.memory_space<vmem>>, vector<16x8xf32>
    %c16_371 = arith.constant 16 : index
    %c192_372 = arith.constant 192 : index
    %232 = vector.load %arg12[%c16_371, %c192_372] : memref<32x200xf32, #tpu.memory_space<vmem>>, vector<16x8xf32>
    tpu.vector_store %arg12[%c16_371, %c192_372], %231 {strides = array<i32>} : memref<32x200xf32, #tpu.memory_space<vmem>>, vector<16x8xf32>,
    %c0_373 = arith.constant 0 : index
    %c0_374 = arith.constant 0 : index
    %233 = vector.load %arg12[%c0_373, %c0_374] : memref<32x200xf32, #tpu.memory_space<vmem>>, vector<32x200xf32>
    %c0_375 = arith.constant 0 : index
    %c0_376 = arith.constant 0 : index
    %234 = vector.load %arg8[%c0_375, %c0_376] : memref<32x200xf32, #tpu.memory_space<vmem>>, vector<32x200xf32>
    %cst_377 = arith.constant 5.000000e-01 : f32
    %235 = vector.broadcast %cst_377 : f32 to vector<32x200xf32>
    %236 = arith.cmpf ogt, %234, %235 : vector<32x200xf32>
    %cst_378 = arith.constant 0.000000e+00 : f32
    %237 = vector.broadcast %cst_378 : f32 to vector<32x200xf32>
    %238 = arith.select %236, %233, %237 : vector<32x200xi1>, vector<32x200xf32>
    %239 = arith.truncf %238 : vector<32x200xf32> to vector<32x200xbf16>
    %c0_379 = arith.constant 0 : index
    %c0_380 = arith.constant 0 : index
    %240 = vector.load %arg5[%c0_379, %c0_380] : memref<200x8xbf16, #tpu.memory_space<vmem>>, vector<200x8xbf16>
    %cst_381 = arith.constant dense<0.000000e+00> : vector<32x8xf32>
    %241 = tpu.matmul %239, %240, %cst_381 {dimension_numbers = #tpu.dot_dimension_numbers<[1], [0], [0], [1], [0, 0, 1, 1], [], []>} : vector<32x200xbf16>, vector<200x8xbf16>, vector<32x8xf32> -> vector<32x8xf32>
    %c0_382 = arith.constant 0 : index
    %c0_383 = arith.constant 0 : index
    %242 = vector.load %arg6[%c0_382, %c0_383] : memref<1x8xf32, #tpu.memory_space<vmem>>, vector<1x8xf32>
    %243 = vector.broadcast %242 : vector<1x8xf32> to vector<32x8xf32>
    %244 = arith.addf %241, %243 : vector<32x8xf32>
    %245 = vector.extract_strided_slice %244 {offsets = [0, 0], sizes = [16, 8], strides = [1, 1]} : vector<32x8xf32> to vector<16x8xf32>
    %246 = arith.index_cast %arg0 : i32 to index
    %c0_384 = arith.constant 0 : index
    %247 = memref.load %arg1[%246, %c0_384] : memref<2x2xf32, #tpu.memory_space<smem>>
    %248 = vector.broadcast %247 : f32 to vector<16x8xf32>
    %249 = arith.mulf %245, %248 : vector<16x8xf32>
    %250 = arith.addf %1, %249 : vector<16x8xf32>
    %251 = vector.extract_strided_slice %244 {offsets = [16, 0], sizes = [16, 8], strides = [1, 1]} : vector<32x8xf32> to vector<16x8xf32>
    %252 = arith.index_cast %arg0 : i32 to index
    %c1 = arith.constant 1 : index
    %253 = memref.load %arg1[%252, %c1] : memref<2x2xf32, #tpu.memory_space<smem>>
    %254 = vector.broadcast %253 : f32 to vector<16x8xf32>
    %255 = arith.mulf %251, %254 : vector<16x8xf32>
    %256 = arith.addf %250, %255 : vector<16x8xf32>
    %c0_385 = arith.constant 0 : index
    %c0_386 = arith.constant 0 : index
    %c0_387 = arith.constant 0 : index
    %257 = vector.load %arg9[%c0_385, %c0_386, %c0_387] : memref<1x16x8xf32, #tpu.memory_space<vmem>>, vector<1x16x8xf32>
    %258 = vector.shape_cast %257 : vector<1x16x8xf32> to vector<16x8xf32>
    %259 = vector.shape_cast %256 : vector<16x8xf32> to vector<1x16x8xf32>
    tpu.vector_store %arg9[%c0_385, %c0_386, %c0_387], %259 {strides = array<i32>} : memref<1x16x8xf32, #tpu.memory_space<vmem>>, vector<1x16x8xf32>,
    return
  }
  func.func @transform_0(%arg0: i32, %arg1: memref<2x2xf32, #tpu.memory_space<smem>>) -> (i32, i32, i32) {
    %c0_i32 = arith.constant 0 : i32
    %c0_i32_0 = arith.constant 0 : i32
    %c0_i32_1 = arith.constant 0 : i32
    return %arg0, %c0_i32, %c0_i32_0 : i32, i32, i32
  }
  func.func @transform_1(%arg0: i32, %arg1: memref<2x2xf32, #tpu.memory_space<smem>>) -> (i32, i32) {
    %c0_i32 = arith.constant 0 : i32
    %c0_i32_0 = arith.constant 0 : i32
    %c0_i32_1 = arith.constant 0 : i32
    return %c0_i32, %c0_i32_0 : i32, i32
  }
  func.func @transform_2(%arg0: i32, %arg1: memref<2x2xf32, #tpu.memory_space<smem>>) -> (i32, i32) {
    %c0_i32 = arith.constant 0 : i32
    %c0_i32_0 = arith.constant 0 : i32
    %c0_i32_1 = arith.constant 0 : i32
    return %c0_i32, %c0_i32_0 : i32, i32
  }
  func.func @transform_3(%arg0: i32, %arg1: memref<2x2xf32, #tpu.memory_space<smem>>) -> (i32, i32) {
    %c0_i32 = arith.constant 0 : i32
    %c0_i32_0 = arith.constant 0 : i32
    %c0_i32_1 = arith.constant 0 : i32
    return %c0_i32, %c0_i32_0 : i32, i32
  }
  func.func @transform_4(%arg0: i32, %arg1: memref<2x2xf32, #tpu.memory_space<smem>>) -> (i32, i32) {
    %c0_i32 = arith.constant 0 : i32
    %c0_i32_0 = arith.constant 0 : i32
    %c0_i32_1 = arith.constant 0 : i32
    return %c0_i32, %c0_i32_0 : i32, i32
  }
  func.func @transform_5(%arg0: i32, %arg1: memref<2x2xf32, #tpu.memory_space<smem>>) -> (i32, i32) {
    %c0_i32 = arith.constant 0 : i32
    %c0_i32_0 = arith.constant 0 : i32
    %c0_i32_1 = arith.constant 0 : i32
    return %c0_i32, %c0_i32_0 : i32, i32
  }
  func.func @transform_6(%arg0: i32, %arg1: memref<2x2xf32, #tpu.memory_space<smem>>) -> (i32, i32) {
    %c0_i32 = arith.constant 0 : i32
    %c0_i32_0 = arith.constant 0 : i32
    %c0_i32_1 = arith.constant 0 : i32
    return %c0_i32, %c0_i32_0 : i32, i32
  }
  func.func @transform_7(%arg0: i32, %arg1: memref<2x2xf32, #tpu.memory_space<smem>>) -> (i32, i32, i32) {
    %c0_i32 = arith.constant 0 : i32
    %c0_i32_0 = arith.constant 0 : i32
    %c0_i32_1 = arith.constant 0 : i32
    return %arg0, %c0_i32, %c0_i32_0 : i32, i32, i32
  }
}

</mosaic_0001>

<bundles_post_ra>
// kernel: tpu_custom_call.1
= control target key start
LH: loop header
LB: loop body
LE: loop exit
PB: predicated region body
PF: predicated region fallthrough
CT: control target
= control target key end

     0   :  { %s2140_s30 = smov [#allocation6]   ;;  %s2923_s0 = inlined_call_operand.vmem [shape: f32[2,2], index: 0, kind: input, shape index: {}]   ;;  %s2924_s1 = inlined_call_operand.vmem [shape: f32[2,16,8], index: 1, kind: input, shape index: {}]   ;;  %s2925_s2 = inlined_call_operand.vmem [shape: bf16[200,8], index: 2, kind: input, shape index: {}]   ;;  %s2926_s3 = inlined_call_operand.vmem [shape: f32[1,8], index: 3, kind: input, shape index: {}]   ;;  %s2927_s4 = inlined_call_operand.vmem [shape: bf16[200,8], index: 4, kind: input, shape index: {}]   ;;  %s2928_s5 = inlined_call_operand.vmem [shape: f32[1,8], index: 5, kind: input, shape index: {}]   ;;  %s2929_s6 = inlined_call_operand.vmem [shape: f32[32,200], index: 6, kind: input, shape index: {}]   ;;  %s2930_s7 = inlined_call_operand.vmem [shape: f32[32,200], index: 7, kind: input, shape index: {}]   ;;  %s2931_s8 = inlined_call_operand.vmem [shape: f32[2,16,8], index: 8, kind: output, shape index: {}]  }
   0x1   :  { %s14_s29 = sshll.u32 %s2923_s0, 4  ;;  %s15_s29 = int_to_ptr.vmem [resolvable:$true] %s14_s29 }
   0x2   :  { %17 = dma.vmem_to_smem %s15_s29, 32, %s2140_s30, [#allocation5] }
   0x3   :  { %2134 = dma.done.wait [#allocation5], 32 }
   0x4   :  { %2135 = vsyncadd [#allocation5], 4294967264 }
   0x5   :  { %20 = sfence }
   0x6   :  { %s2204_s9 = smov 0  }
   0x7 LB: > { %s2210_s10 = sadd.s32 4294967295, %s2138_s9   ;;  %p1938_p0 = scmp.ge.s32.totalorder %s2138_s9, 1  ;;  %s2138_s9 = sphi %s2204_s9, %s26_s9  }
   0x8   : > { %p246_p1 = scmp.lt.s32.totalorder %s2138_s9, 3 }
   0xa   : > { %p247_p2 = pnand %p1938_p0, %p246_p1 }
   0xb   : > { %p278_p3 = scmp.lt.s32.totalorder (!%p247_p2), %s2210_s10, 1  ;;  %s2141_s15 = smov (!%p247_p2), 16  }
   0xc   : > { %250 = sbr.rel (%p247_p2) target bundleno = 947 (0x3b3), region = 48  ;;  %s2142_s16 = smov (!%p247_p2), 8  }
   0xd   : > { %s2143_s17 = smov (!%p247_p2), 24   ;;  %s2144_s18 = smov (!%p247_p2), 32  }
   0xe   : > { %s2145_s19 = smov (!%p247_p2), 40   ;;  %s2146_s20 = smov (!%p247_p2), 48  }
   0xf   : > { %s2147_s21 = smov (!%p247_p2), 56   ;;  %s2148_s22 = smov (!%p247_p2), 64  }
  0x10   : > { %s2149_s23 = smov (!%p247_p2), 72   ;;  %s2150_s24 = smov (!%p247_p2), 80  }
  0x11   : > { %s2216_s0 = scalar_select %p278_p3, %s2210_s10, 1  ;;  %vm291_vm0 = vcmask 64512   ;;  %vm310_vm1 = vcmask 130112   ;;  %v647_v25 = vld [vmem:[#allocation3 + $0xe] sm:$0xff]  ;;  %vm323_vm2 = vcmask 195712   ;;  %vm336_vm3 = vcmask 261312  }
  0x12   : > { %s2933_s25 = smov 88   ;;  %s2152_s26 = smov 96   ;;  %598 = vst.msk [vmem:[#allocation4 + $0x30] sm:$0xff] %vm291_vm0, %v647_v25  ;;  %v599_v29 = vld [vmem:[#allocation3 + $0x7] sm:$0xff]  ;;  %v2311_v31 = vld [vmem:[#allocation3 + $0xf] sm:$0xff]  ;;  %vm349_vm4 = vcmask 326912  }
  0x13   : > { %s2932_s11 = sshll.u32 %s2216_s0, 4  ;;  %s2153_s27 = smov 104   ;;  %v612_v35 = vld [vmem:[#allocation3 + $0x10] sm:$0xff]  ;;  %v611_v36 = vld [vmem:[#allocation3 + $0x8] sm:$0xff]  ;;  %vm362_vm5 = vcmask 392512   ;;  %v2067_v43 = vld [vmem:[%s2925_s2 + $0x38] sm:$0xff] }
  0x14   : > { %s282_s14 = scalar_lea.vmem %s2924_s1, %s2932_s11  ;;  %s2154_s28 = smov 112   ;;  %v2320_v37 = vld [vmem:[#allocation3 + $0x9] sm:$0xff]  ;;  %1030 = vmatpush.bf16.msra.mxu0 %v2067_v43  ;;  %vm375_vm6 = vcmask 458112   ;;  %vm388_vm7 = vcmask 523712   ;;  %vm401_vm8 = vcmask 589312   ;;  %v2064_v53 = vld [vmem:[%s2925_s2 + $0x20] sm:$0xff] }
  0x15   : > { %v2224_v0 = vld [vmem:[%s282_s14] sm:$0xff]  ;;  %v2226_v1 = vld [vmem:[%s282_s14 + $0x8] sm:$0xff]  ;;  %s2155_s29 = smov 120   ;;  %v2066_v47 = vld [vmem:[%s2925_s2 + $0x30] sm:$0xff]  ;;  %vm2942_vm9 = vcmask 654912   ;;  %vm2941_vm10 = vcmask 720512  }
  0x16   : > { %292 = vst.msk [vmem:[#allocation2 + $0x8] sm:$0xff] %vm291_vm0, %v2224_v0  ;;  %v635_v41 = vld [vmem:[#allocation3 + $0xa] sm:$0xff]  ;;  %v2063_v56 = vld [vmem:[%s2925_s2 + $0x18] sm:$0xff]  ;;  %vm2940_vm11 = vcmask 786112   ;;  %vm2938_vm12 = vcmask 851712   ;;  %vm2937_vm13 = vcmask 917312  }
  0x17   : > { %294 = vst.msk [vmem:[#allocation3 + $0x18] sm:$0xff] %vm291_vm0, %v2224_v0  ;;  %v2065_v50 = vld [vmem:[%s2925_s2 + $0x28] sm:$0xff]  ;;  %v2062_v60 = vld [vmem:[%s2925_s2 + $0x10] sm:$0xff]  ;;  %vm2936_vm14 = vcmask 982912   ;;  %vm2935_vm15 = vcmask 1048512   ;;  %s2951_s13 = smov 88  }
  0x18   : > { %293 = vst.msk [vmem:[#allocation2 + $0x10] sm:$0xff] %vm291_vm0, %v2226_v1  ;;  %1031 = vmatpush.bf16.msra.mxu0 %v2066_v47  ;;  %v2061_v63 = vld [vmem:[%s2925_s2 + $0x8] sm:$0xff]  ;;  %s2055_s30 = sshll.u32 %s2210_s10, 7  ;;  %s2981_s10 = sshll.u32 %s2216_s0, 4 }
  0x19   : > { %295 = vst.msk [vmem:[#allocation3 + $0x20] sm:$0xff] %vm291_vm0, %v2226_v1 }
  0x1c   : > { %1032 = vmatpush.bf16.msra.mxu0 %v2065_v50  ;;  %v2068_v50 = vld [vmem:[%s2925_s2 + $0x40] sm:$0xff] }
  0x1d   : > { %v313_v2 = vld [vmem:[#allocation2 + $0x4] sm:$0xff] }
  0x1e   : > { %v300_v3 = vld [vmem:[#allocation2 + $0x3] sm:$0xff]  ;;  %317 = vrot.lane.b32.xlu1 %v313_v2, %s2141_s15  ;;  %v624_v42 = vld [vmem:[#allocation3 + $0x11] sm:$0xff] }
  0x1f   : > { %304 = vrot.lane.b32.xlu0 %v300_v3, %s2142_s16  ;;  %v365_v4 = vld [vmem:[#allocation2 + $0x5] sm:$0xff]  ;;  %v2243_v7 = vld [vmem:[#allocation2 + $0xd] sm:$0xff]  ;;  %v572_v24 = vld [vmem:[#allocation2 + $0x15] sm:$0xff] }
  0x20   : > { %330 = vrot.lane.b32.xlu2 %v365_v4, %s2143_s17  ;;  %v2239_v5 = vld [vmem:[#allocation2 + $0xc] sm:$0xff]  ;;  %v296_v18 = vld [vmem:[#allocation2 + $0x2] sm:$0xff]  ;;  %v524_v20 = vld [vmem:[#allocation2 + $0x14] sm:$0xff]  ;;  %1033 = vmatpush.bf16.msra.mxu0 %v2064_v53 }
  0x21   : > { %v2241_v6 = vld [vmem:[#allocation2 + $0xb] sm:$0xff]  ;;  %298 = vst.msk [vmem:[#allocation4] sm:$0xff] %vm291_vm0, %v296_v18  ;;  %v512_v19 = vld [vmem:[#allocation2 + $0x13] sm:$0xff]  ;;  %v720_v18 = vld [vmem:[#allocation3 + $0x1f] sm:$0xff] }
  0x22   : > { %v2251_v8 = vld [vmem:[#allocation2 + $0xe] sm:$0xff]  ;;  %v339_v9 = vld [vmem:[#allocation2 + $0x6] sm:$0xff]  ;;  %v584_v30 = vld [vmem:[#allocation2 + $0x16] sm:$0xff]  ;;  %781 = vst.msk [vmem:[#allocation4 + $0x28] sm:$0xff] %vm291_vm0, %v720_v18 }
  0x23   : > { %v457_v10 = vld [vmem:[#allocation2 + $0x11] sm:$0xff]  ;;  %v391_v11 = vld [vmem:[#allocation2 + $0x7] sm:$0xff]  ;;  %v2372_v62 = vld [vmem:[#allocation3 + $0x19] sm:$0xff] }
  0x24   : > { %498 = vst.msk [vmem:[#allocation4 + $0x18] sm:$0xff] %vm291_vm0, %v457_v10  ;;  %v456_v12 = vld [vmem:[#allocation2 + $0x9] sm:$0xff]  ;;  %v470_v17 = vld [vmem:[#allocation2 + $0x12] sm:$0xff]  ;;  %1034 = vmatpush.bf16.msra.mxu0 %v2063_v56 }
  0x25   : > { %497 = vst.msk [vmem:[#allocation4 + $0x8] sm:$0xff] %vm291_vm0, %v456_v12  ;;  %v404_v13 = vld [vmem:[#allocation2 + $0x8] sm:$0xff]  ;;  %v405_v15 = vld [vmem:[#allocation2 + $0x10] sm:$0xff]  ;;  %v2360_v57 = vld [vmem:[#allocation3 + $0x18] sm:$0xff] }
  0x26   : > { %319 = vrot.lane.b32.xlu1 %v2239_v5, %s2141_s15  ;;  %v392_v14 = vld [vmem:[#allocation2 + $0xf] sm:$0xff]  ;;  %v660_v55 = vld [vmem:[#allocation3 + $0x17] sm:$0xff]  ;;  %v831_v47 = vld [vmem:[#allocation3 + $0x27] sm:$0xff] }
  0x27   : > { %306 = vrot.lane.b32.xlu0 %v2241_v6, %s2142_s16  ;;  %v499_v16 = vld [vmem:[#allocation2 + $0xa] sm:$0xff]  ;;  %v636_v44 = vld [vmem:[#allocation3 + $0x12] sm:$0xff]  ;;  %782 = vst.msk [vmem:[#allocation4 + $0x38] sm:$0xff] %vm291_vm0, %v831_v47 }
  0x28   : > { %332 = vrot.lane.b32.xlu2 %v2243_v7, %s2143_s17  ;;  %299 = vst.msk [vmem:[#allocation4 + $0x10] sm:$0xff] %vm291_vm0, %v499_v16  ;;  %v2341_v49 = vld [vmem:[#allocation3 + $0x16] sm:$0xff]  ;;  %1035 = vmatpush.bf16.msra.mxu0 %v2062_v60 }
  0x29   : > { %v844_v56 = vld [vmem:[#allocation3 + $0x30] sm:$0xff] }
  0x2a   : > { %v2493_v60 = vld [vmem:[#allocation3 + $0x31] sm:$0xff] }
  0x2c   : > { %1036 = vmatpush.bf16.msra.mxu0 %v2061_v63 }
  0x2e   : > { %345 = vrot.lane.b32.xlu1 %v2251_v8, %s2144_s18 }
  0x2f   : > { %343 = vrot.lane.b32.xlu0 %v339_v9, %s2144_s18 }
  0x30   : > { %356 = vrot.lane.b32.xlu2 %v313_v2, %s2145_s19 }
  0x36   : > { %369 = vrot.lane.b32.xlu1 %v365_v4, %s2146_s20  ;;  %v2060_v4 = vld [vmem:[%s2925_s2] sm:$0xff] }
  0x37   : > { %358 = vrot.lane.b32.xlu0 %v2239_v5, %s2145_s19  ;;  %1037 = vmatpush.bf16.msra.mxu0 %v2060_v4  ;;  %v890_v4 = vld [vmem:[%s2929_s6 + $0x18] sm:$0xff] }
  0x38   : > { %371 = vrot.lane.b32.xlu2 %v2243_v7, %s2146_s20 }
  0x3e   : > { %384 = vrot.lane.b32.xlu1 %v2251_v8, %s2147_s21 }
  0x3f   : > { %382 = vrot.lane.b32.xlu0 %v339_v9, %s2147_s21 }
  0x40   : > { %395 = vrot.lane.b32.xlu2 %v391_v11, %s2148_s22 }
  0x46   : > { %408 = vrot.lane.b32.xlu1 %v404_v13, %s2149_s23 }
  0x47   : > { %397 = vrot.lane.b32.xlu0 %v392_v14, %s2148_s22 }
  0x48   : > { %410 = vrot.lane.b32.xlu2 %v405_v15, %s2149_s23 }
  0x4e   : > { %423 = vrot.lane.b32.xlu1 %v2251_v8, %s2150_s24 }
  0x4f   : > { %421 = vrot.lane.b32.xlu0 %v339_v9, %s2150_s24 }
  0x50   : > { %434 = vrot.lane.b32.xlu2 %v391_v11, %s2933_s25 }
  0x56   : > { %447 = vrot.lane.b32.xlu1 %v404_v13, %s2152_s26 }
  0x57   : > { %436 = vrot.lane.b32.xlu0 %v392_v14, %s2933_s25 }
  0x58   : > { %449 = vrot.lane.b32.xlu2 %v405_v15, %s2152_s26 }
  0x5e   : > { %462 = vrot.lane.b32.xlu1 %v457_v10, %s2153_s27 }
  0x5f   : > { %460 = vrot.lane.b32.xlu0 %v456_v12, %s2153_s27  ;;  %v2402_v12 = vld [vmem:[#allocation3 + $0x1e] sm:$0xff] }
  0x60   : > { %473 = vrot.lane.b32.xlu2 %v499_v16, %s2154_s28 }
  0x66   : > { %486 = vrot.lane.b32.xlu1 %v404_v13, %s2155_s29  ;;  %v2404_v13 = vld [vmem:[#allocation3 + $0x21] sm:$0xff] }
  0x67   : > { %475 = vrot.lane.b32.xlu0 %v470_v17, %s2154_s28 }
  0x68   : > { %488 = vrot.lane.b32.xlu2 %v405_v15, %s2155_s29 }
  0x6e   : > { %505 = vrot.lane.b32.xlu1 %v470_v17, %s2142_s16 }
  0x6f   : > { %503 = vrot.lane.b32.xlu0 %v499_v16, %s2142_s16 }
  0x70   : > { %515 = vrot.lane.b32.xlu2 %v2241_v6, %s2141_s15 }
  0x76   : > { %527 = vrot.lane.b32.xlu1 %v2239_v5, %s2143_s17 }
  0x77   : > { %517 = vrot.lane.b32.xlu0 %v512_v19, %s2141_s15 }
  0x78   : > { %529 = vrot.lane.b32.xlu2 %v524_v20, %s2143_s17 }
  0x7a   : > { %v331_v21 = vpop.permute.xlu2 %330 }
  0x7e   : > { %541 = vrot.lane.b32.xlu1 %v470_v17, %s2144_s18  ;;  %v2415_v17 = vld [vmem:[#allocation3 + $0x29] sm:$0xff] }
  0x7f   : > { %539 = vrot.lane.b32.xlu0 %v499_v16, %s2144_s18 }
  0x80   : > { %551 = vrot.lane.b32.xlu2 %v2241_v6, %s2145_s19  ;;  %v2387_v6 = vld [vmem:[#allocation3 + $0x20] sm:$0xff] }
  0x82   : > { %v333_v22 = vpop.permute.xlu2 %332 }
  0x86   : > { %563 = vrot.lane.b32.xlu1 %v2239_v5, %s2146_s20 }
  0x87   : > { %553 = vrot.lane.b32.xlu0 %v512_v19, %s2145_s19 }
  0x88   : > { %565 = vrot.lane.b32.xlu2 %v524_v20, %s2146_s20 }
  0x8a   : > { %v357_v23 = vpop.permute.xlu2 %356 }
  0x8e   : > { %577 = vrot.lane.b32.xlu1 %v572_v24, %s2147_s21  ;;  %v887_v24 = vld [vmem:[%s2929_s6] sm:$0xff] }
  0x8f   : > { %575 = vrot.lane.b32.xlu0 %v2243_v7, %s2147_s21  ;;  %v2389_v7 = vld [vmem:[#allocation3 + $0x1a] sm:$0xff] }
  0x90   : > { %587 = vrot.lane.b32.xlu2 %v2251_v8, %s2148_s22  ;;  %v318_v26 = vpop.permute.xlu1 %317  ;;  %v2391_v8 = vld [vmem:[#allocation3 + $0x28] sm:$0xff] }
  0x91   : > { %v305_v27 = vpop.permute.xlu0 %304 }
  0x92   : > { %311 = vst.msk [vmem:[#allocation4] sm:$0xff] %vm310_vm1, %v305_v27  ;;  %v372_v28 = vpop.permute.xlu2 %371 }
  0x93   : > { %324 = vst.msk [vmem:[#allocation4] sm:$0xff] %vm323_vm2, %v318_v26  ;;  %v939_v26 = vld [vmem:[%s2925_s2 + $0x60] sm:$0xf] }
  0x94   : > { %337 = vst.msk [vmem:[#allocation4] sm:$0xff] %vm336_vm3, %v331_v21  ;;  %v993_v27 = vunpack.c.l.b16 %v939_v26 }
  0x96   : > { %603 = vrot.lane.b32.xlu1 %v599_v29, %s2142_s16 }
  0x97   : > { %589 = vrot.lane.b32.xlu0 %v584_v30, %s2148_s22 }
  0x98   : > { %605 = vrot.lane.b32.xlu2 %v2311_v31, %s2142_s16  ;;  %v320_v32 = vpop.permute.xlu1 %319 }
  0x99   : > { %v307_v33 = vpop.permute.xlu0 %306 }
  0x9a   : > { %312 = vst.msk [vmem:[#allocation4 + $0x10] sm:$0xff] %vm310_vm1, %v307_v33  ;;  %v396_v34 = vpop.permute.xlu2 %395 }
  0x9b   : > { %325 = vst.msk [vmem:[#allocation4 + $0x10] sm:$0xff] %vm323_vm2, %v320_v32 }
  0x9c   : > { %338 = vst.msk [vmem:[#allocation4 + $0x10] sm:$0xff] %vm336_vm3, %v333_v22  ;;  %v2425_v22 = vld [vmem:[#allocation3 + $0x2a] sm:$0xff] }
  0x9e   : > { %617 = vrot.lane.b32.xlu1 %v612_v35, %s2141_s15 }
  0x9f   : > { %615 = vrot.lane.b32.xlu0 %v611_v36, %s2141_s15 }
  0xa0   : > { %627 = vrot.lane.b32.xlu2 %v2320_v37, %s2143_s17  ;;  %v346_v38 = vpop.permute.xlu1 %345 }
  0xa1   : > { %v344_v39 = vpop.permute.xlu0 %343  ;;  %351 = vst.msk [vmem:[#allocation4 + $0x10] sm:$0xff] %vm349_vm4, %v346_v38  ;;  %v819_v38 = vld [vmem:[#allocation3 + $0x26] sm:$0xff] }
  0xa2   : > { %v411_v40 = vpop.permute.xlu2 %410  ;;  %350 = vst.msk [vmem:[#allocation4] sm:$0xff] %vm349_vm4, %v344_v39  ;;  %v2071_v39 = vld [vmem:[%s2925_s2 + $0x58] sm:$0xff] }
  0xa3   : > { %363 = vst.msk [vmem:[#allocation4] sm:$0xff] %vm362_vm5, %v357_v23  ;;  %v807_v23 = vld [vmem:[#allocation3 + $0x22] sm:$0xff] }
  0xa6   : > { %639 = vrot.lane.b32.xlu1 %v635_v41, %s2144_s18  ;;  %v595_v41 = vld [vmem:[#allocation3 + $0x6] sm:$0xff] }
  0xa7   : > { %629 = vrot.lane.b32.xlu0 %v624_v42, %s2143_s17  ;;  %597 = vst.msk [vmem:[#allocation4 + $0x20] sm:$0xff] %vm291_vm0, %v595_v41 }
  0xa8   : > { %641 = vrot.lane.b32.xlu2 %v636_v44, %s2144_s18  ;;  %v370_v45 = vpop.permute.xlu1 %369 }
  0xa9   : > { %v359_v46 = vpop.permute.xlu0 %358  ;;  %376 = vst.msk [vmem:[#allocation4] sm:$0xff] %vm375_vm6, %v370_v45 }
  0xaa   : > { %v435_v48 = vpop.permute.xlu2 %434  ;;  %364 = vst.msk [vmem:[#allocation4 + $0x10] sm:$0xff] %vm362_vm5, %v359_v46  ;;  %v2069_v46 = vld [vmem:[%s2925_s2 + $0x48] sm:$0xff] }
  0xab   : > { %377 = vst.msk [vmem:[#allocation4 + $0x10] sm:$0xff] %vm375_vm6, %v372_v28  ;;  %v1006_v28 = vpack.c.b16 %v993_v27, %v993_v27 }
  0xae   : > { %653 = vrot.lane.b32.xlu1 %v2341_v49, %s2145_s19 }
  0xaf   : > { %651 = vrot.lane.b32.xlu0 %v647_v25, %s2145_s19  ;;  %v889_v25 = vld [vmem:[%s2929_s6 + $0x10] sm:$0xff] }
  0xb0   : > { %663 = vrot.lane.b32.xlu2 %v2311_v31, %s2146_s20  ;;  %v385_v51 = vpop.permute.xlu1 %384 }
  0xb1   : > { %v383_v52 = vpop.permute.xlu0 %382  ;;  %390 = vst.msk [vmem:[#allocation4 + $0x10] sm:$0xff] %vm388_vm7, %v385_v51 }
  0xb2   : > { %v450_v54 = vpop.permute.xlu2 %449  ;;  %389 = vst.msk [vmem:[#allocation4] sm:$0xff] %vm388_vm7, %v383_v52  ;;  %v832_v52 = vld [vmem:[#allocation3 + $0x2f] sm:$0xff] }
  0xb3   : > { %402 = vst.msk [vmem:[#allocation4] sm:$0xff] %vm401_vm8, %v396_v34 }
  0xb6   : > { %675 = vrot.lane.b32.xlu1 %v612_v35, %s2147_s21 }
  0xb7   : > { %665 = vrot.lane.b32.xlu0 %v660_v55, %s2146_s20 }
  0xb8   : > { %677 = vrot.lane.b32.xlu2 %v2360_v57, %s2147_s21  ;;  %v409_v58 = vpop.permute.xlu1 %408 }
  0xb9   : > { %v398_v59 = vpop.permute.xlu0 %397  ;;  %415 = vst.msk [vmem:[#allocation4] sm:$0xff] %vm2942_vm9, %v409_v58 }
  0xba   : > { %v474_v61 = vpop.permute.xlu2 %473  ;;  %403 = vst.msk [vmem:[#allocation4 + $0x10] sm:$0xff] %vm401_vm8, %v398_v59 }
  0xbb   : > { %416 = vst.msk [vmem:[#allocation4 + $0x10] sm:$0xff] %vm2942_vm9, %v411_v40  ;;  %v2448_v40 = vld [vmem:[#allocation3 + $0x2e] sm:$0xff] }
  0xbe   : > { %689 = vrot.lane.b32.xlu1 %v2372_v62, %s2148_s22 }
  0xbf   : > { %687 = vrot.lane.b32.xlu0 %v624_v42, %s2148_s22 }
  0xc0   : > { %699 = vrot.lane.b32.xlu2 %v636_v44, %s2149_s23  ;;  %v424_v2 = vpop.permute.xlu1 %423  ;;  %v2070_v44 = vld [vmem:[%s2925_s2 + $0x50] sm:$0xff] }
  0xc1   : > { %v422_v3 = vpop.permute.xlu0 %421  ;;  %429 = vst.msk [vmem:[#allocation4 + $0x10] sm:$0xff] %vm2941_vm10, %v424_v2  ;;  %v888_v2 = vld [vmem:[%s2929_s6 + $0x8] sm:$0xff] }
  0xc2   : > { %v489_v5 = vpop.permute.xlu2 %488  ;;  %428 = vst.msk [vmem:[#allocation4] sm:$0xff] %vm2941_vm10, %v422_v3  ;;  %v868_v3 = vld [vmem:[#allocation3 + $0x32] sm:$0xff] }
  0xc3   : > { %441 = vst.msk [vmem:[#allocation4] sm:$0xff] %vm2940_vm11, %v435_v48 }
  0xc6   : > { %787 = vrot.lane.b32.xlu1 %v2387_v6, %s2142_s16 }
  0xc7   : > { %701 = vrot.lane.b32.xlu0 %v2389_v7, %s2149_s23 }
  0xc8   : > { %789 = vrot.lane.b32.xlu2 %v2391_v8, %s2142_s16  ;;  %v448_v9 = vpop.permute.xlu1 %447 }
  0xc9   : > { %v437_v10 = vpop.permute.xlu0 %436  ;;  %454 = vst.msk [vmem:[#allocation4] sm:$0xff] %vm2938_vm12, %v448_v9 }
  0xca   : > { %v516_v11 = vpop.permute.xlu2 %515  ;;  %442 = vst.msk [vmem:[#allocation4 + $0x10] sm:$0xff] %vm2940_vm11, %v437_v10 }
  0xcb   : > { %455 = vst.msk [vmem:[#allocation4 + $0x10] sm:$0xff] %vm2938_vm12, %v450_v54 }
  0xce   : > { %713 = vrot.lane.b32.xlu1 %v2402_v12, %s2150_s24 }
  0xcf   : > { %711 = vrot.lane.b32.xlu0 %v2341_v49, %s2150_s24 }
  0xd0   : > { %799 = vrot.lane.b32.xlu2 %v2404_v13, %s2141_s15  ;;  %v463_v14 = vpop.permute.xlu1 %462 }
  0xd1   : > { %v461_v15 = vpop.permute.xlu0 %460  ;;  %468 = vst.msk [vmem:[#allocation4 + $0x10] sm:$0xff] %vm2937_vm13, %v463_v14 }
  0xd2   : > { %v530_v16 = vpop.permute.xlu2 %529  ;;  %467 = vst.msk [vmem:[#allocation4] sm:$0xff] %vm2937_vm13, %v461_v15  ;;  %vm2939_vm13 = vcmask 1043456  }
  0xd3   : > { %480 = vst.msk [vmem:[#allocation4] sm:$0xff] %vm2936_vm14, %v474_v61  ;;  %v1028_v34 = vsel %vm2939_vm13, %v1006_v28, 0 }
  0xd4   : > { %1052 = vmatpush.bf16.msra.mxu1 %v1028_v34 }
  0xd6   : > { %723 = vrot.lane.b32.xlu1 %v660_v55, %s2933_s25 }
  0xd7   : > { %801 = vrot.lane.b32.xlu0 %v2415_v17, %s2141_s15 }
  0xd8   : > { %725 = vrot.lane.b32.xlu2 %v720_v18, %s2933_s25  ;;  %v487_v19 = vpop.permute.xlu1 %486  ;;  %1053 = vmatpush.bf16.msra.mxu1 %v2071_v39 }
  0xd9   : > { %v476_v20 = vpop.permute.xlu0 %475  ;;  %493 = vst.msk [vmem:[#allocation4] sm:$0xff] %vm2935_vm15, %v487_v19 }
  0xda   : > { %v552_v21 = vpop.permute.xlu2 %551  ;;  %481 = vst.msk [vmem:[#allocation4 + $0x10] sm:$0xff] %vm2936_vm14, %v476_v20  ;;  %vm897_vm14 = vcmp.gt.f32.partialorder %v889_v25, 0.5 }
  0xdb   : > { %494 = vst.msk [vmem:[#allocation4 + $0x10] sm:$0xff] %vm2935_vm15, %v489_v5  ;;  %vm895_vm15 = vcmp.gt.f32.partialorder %v887_v24, 0.5 }
  0xdc   : > { %vm1991_vm12 = vmpackc.low %vm897_vm14, %vm895_vm15  ;;  %1054 = vmatpush.bf16.msra.mxu1 %v2070_v44  ;;  %vm898_vm14 = vcmp.gt.f32.partialorder %v890_v4, 0.5  ;;  %vm1019_vm15 = vcmask 588800  }
  0xde   : > { %813 = vrot.lane.b32.xlu1 %v2425_v22, %s2143_s17 }
  0xdf   : > { %811 = vrot.lane.b32.xlu0 %v807_v23, %s2143_s17 }
  0xe0   : > { %735 = vrot.lane.b32.xlu2 %v2360_v57, %s2152_s26  ;;  %v506_v29 = vpop.permute.xlu1 %505  ;;  %v879_v32 = vld [vmem:[#allocation4] sm:$0xff]  ;;  %1055 = vmatpush.bf16.msra.mxu1 %v2069_v46 }
  0xe1   : > { %v504_v30 = vpop.permute.xlu0 %503  ;;  %510 = vst.msk [vmem:[#allocation4 + $0x18] sm:$0xff] %vm310_vm1, %v506_v29 }
  0xe2   : > { %v566_v33 = vpop.permute.xlu2 %565  ;;  %509 = vst.msk [vmem:[#allocation4 + $0x8] sm:$0xff] %vm310_vm1, %v504_v30  ;;  %v881_v35 = vld [vmem:[#allocation4 + $0x10] sm:$0xff] }
  0xe3   : > { %v1992_v36 = vpack.c.bf16 %v881_v35, %v879_v32  ;;  %521 = vst.msk [vmem:[#allocation4 + $0x8] sm:$0xff] %vm323_vm2, %v516_v11 }
  0xe4   : > { %1056 = vmatpush.bf16.msra.mxu1 %v2068_v50 }
  0xe5   : > { %1993 = vmatmul.msk.bf16.vlgmr.msra.gmra.mxu0 %vm1991_vm12, %v1992_v36  ;;  %vm896_vm12 = vcmp.gt.f32.partialorder %v888_v2, 0.5 }
  0xe6   : > { %823 = vrot.lane.b32.xlu1 %v819_v38, %s2144_s18 }
  0xe7   : > { %737 = vrot.lane.b32.xlu0 %v2387_v6, %s2152_s26 }
  0xe8   : > { %825 = vrot.lane.b32.xlu2 %v2448_v40, %s2144_s18  ;;  %v528_v42 = vpop.permute.xlu1 %527 }
  0xe9   : > { %v518_v43 = vpop.permute.xlu0 %517  ;;  %533 = vst.msk [vmem:[#allocation4 + $0x8] sm:$0xff] %vm336_vm3, %v528_v42 }
  0xea   : > { %v588_v45 = vpop.permute.xlu2 %587  ;;  %522 = vst.msk [vmem:[#allocation4 + $0x18] sm:$0xff] %vm323_vm2, %v518_v43 }
  0xeb   : > { %534 = vst.msk [vmem:[#allocation4 + $0x18] sm:$0xff] %vm336_vm3, %v530_v16 }
  0xee   : > { %749 = vrot.lane.b32.xlu1 %v2404_v13, %s2153_s27 }
  0xef   : > { %747 = vrot.lane.b32.xlu0 %v2372_v62, %s2153_s27 }
  0xf0   : > { %835 = vrot.lane.b32.xlu2 %v831_v47, %s2145_s19  ;;  %v542_v48 = vpop.permute.xlu1 %541 }
  0xf1   : > { %v540_v49 = vpop.permute.xlu0 %539  ;;  %546 = vst.msk [vmem:[#allocation4 + $0x18] sm:$0xff] %vm349_vm4, %v542_v48 }
  0xf2   : > { %v606_v51 = vpop.permute.xlu2 %605  ;;  %545 = vst.msk [vmem:[#allocation4 + $0x8] sm:$0xff] %vm349_vm4, %v540_v49 }
  0xf3   : > { %557 = vst.msk [vmem:[#allocation4 + $0x8] sm:$0xff] %vm362_vm5, %v552_v21 }
  0xf4   : > { %610 = vst.msk [vmem:[#allocation4 + $0x30] sm:$0xff] %vm310_vm1, %v606_v51 }
  0xf6   : > { %759 = vrot.lane.b32.xlu1 %v2389_v7, %s2154_s28 }
  0xf7   : > { %837 = vrot.lane.b32.xlu0 %v832_v52, %s2145_s19 }
  0xf8   : > { %761 = vrot.lane.b32.xlu2 %v807_v23, %s2154_s28  ;;  %v564_v53 = vpop.permute.xlu1 %563 }
  0xf9   : > { %v554_v54 = vpop.permute.xlu0 %553  ;;  %569 = vst.msk [vmem:[#allocation4 + $0x8] sm:$0xff] %vm375_vm6, %v564_v53  ;;  %v891_v53 = vld [vmem:[%s2929_s6 + $0x20] sm:$0xff] }
  0xfa   : > { %v628_v55 = vpop.permute.xlu2 %627  ;;  %558 = vst.msk [vmem:[#allocation4 + $0x18] sm:$0xff] %vm362_vm5, %v554_v54  ;;  %v893_v54 = vld [vmem:[%s2929_s6 + $0x30] sm:$0xff] }
  0xfb   : > { %570 = vst.msk [vmem:[#allocation4 + $0x18] sm:$0xff] %vm375_vm6, %v566_v33 }
  0xfe   : > { %849 = vrot.lane.b32.xlu1 %v844_v56, %s2146_s20 }
  0xff   : > { %847 = vrot.lane.b32.xlu0 %v2391_v8, %s2146_s20 }
 0x100   : > { %771 = vrot.lane.b32.xlu2 %v2402_v12, %s2155_s29  ;;  %v578_v57 = vpop.permute.xlu1 %577 }
 0x101   : > { %v576_v58 = vpop.permute.xlu0 %575  ;;  %582 = vst.msk [vmem:[#allocation4 + $0x18] sm:$0xff] %vm388_vm7, %v578_v57 }
 0x102   : > { %v642_v59 = vpop.permute.xlu2 %641  ;;  %581 = vst.msk [vmem:[#allocation4 + $0x8] sm:$0xff] %vm388_vm7, %v576_v58 }
 0x103   : > { %593 = vst.msk [vmem:[#allocation4 + $0x8] sm:$0xff] %vm401_vm8, %v588_v45 }
 0x106   : > { %859 = vrot.lane.b32.xlu1 %v2415_v17, %s2147_s21 }
 0x107   : > { %773 = vrot.lane.b32.xlu0 %v819_v38, %s2155_s29 }
 0x108   : > { %861 = vrot.lane.b32.xlu2 %v2493_v60, %s2147_s21  ;;  %v604_v61 = vpop.permute.xlu1 %603 }
 0x109   : > { %v590_v62 = vpop.permute.xlu0 %589  ;;  %609 = vst.msk [vmem:[#allocation4 + $0x20] sm:$0xff] %vm310_vm1, %v604_v61  ;;  %v894_v61 = vld [vmem:[%s2929_s6 + $0x38] sm:$0xff] }
 0x10a   : > { %v664_v63 = vpop.permute.xlu2 %663  ;;  %594 = vst.msk [vmem:[#allocation4 + $0x18] sm:$0xff] %vm401_vm8, %v590_v62  ;;  %v880_v5 = vld [vmem:[#allocation4 + $0x8] sm:$0xff] }
 0x10b   : > { %v904_v9 = vsel %vm896_vm12, %v880_v5, 0.0  ;;  %vm2943_vm12 = vcmask 851712   ;;  %v892_v62 = vld [vmem:[%s2929_s6 + $0x28] sm:$0xff] }
 0x10e   : > { %873 = vrot.lane.b32.xlu1 %v868_v3, %s2148_s22 }
 0x10f   : > { %871 = vrot.lane.b32.xlu0 %v2425_v22, %s2148_s22 }
 0x110   : > { %v618_v6 = vpop.permute.xlu1 %617 }
 0x111   : > { %v616_v7 = vpop.permute.xlu0 %615  ;;  %622 = vst.msk [vmem:[#allocation4 + $0x30] sm:$0xff] %vm323_vm2, %v618_v6  ;;  %v882_v10 = vld [vmem:[#allocation4 + $0x18] sm:$0xff] }
 0x112   : > { %v678_v11 = vpop.permute.xlu2 %677  ;;  %621 = vst.msk [vmem:[#allocation4 + $0x20] sm:$0xff] %vm323_vm2, %v616_v7  ;;  %v906_v12 = vsel %vm898_vm14, %v882_v10, 0.0  ;;  %vm2944_vm14 = vmmov %vm2943_vm12  ;;  %v2571_v7 = vld [vmem:[%s2926_s3] ss:$0 sm:$0xff] }
 0x113   : > { %v912_v13 = vpack.c.bf16 %v906_v12, %v904_v9  ;;  %633 = vst.msk [vmem:[#allocation4 + $0x20] sm:$0xff] %vm336_vm3, %v628_v55 }
 0x115   : > { %1997 = vmatmul.msk.bf16.vlgmr.msra.gmra.mxu1 %vm1019_vm15, %v912_v13 }
 0x118   : > { %v640_v14 = vpop.permute.xlu1 %639 }
 0x119   : > { %v630_v15 = vpop.permute.xlu0 %629  ;;  %645 = vst.msk [vmem:[#allocation4 + $0x20] sm:$0xff] %vm349_vm4, %v640_v14 }
 0x11a   : > { %v700_v16 = vpop.permute.xlu2 %699  ;;  %634 = vst.msk [vmem:[#allocation4 + $0x30] sm:$0xff] %vm336_vm3, %v630_v15 }
 0x11b   : > { %646 = vst.msk [vmem:[#allocation4 + $0x30] sm:$0xff] %vm349_vm4, %v642_v59 }
 0x120   : > { %v654_v17 = vpop.permute.xlu1 %653 }
 0x121   : > { %v652_v18 = vpop.permute.xlu0 %651  ;;  %658 = vst.msk [vmem:[#allocation4 + $0x30] sm:$0xff] %vm362_vm5, %v654_v17 }
 0x122   : > { %v790_v19 = vpop.permute.xlu2 %789  ;;  %657 = vst.msk [vmem:[#allocation4 + $0x20] sm:$0xff] %vm362_vm5, %v652_v18 }
 0x123   : > { %669 = vst.msk [vmem:[#allocation4 + $0x20] sm:$0xff] %vm375_vm6, %v664_v63 }
 0x124   : > { %794 = vst.msk [vmem:[#allocation4 + $0x38] sm:$0xff] %vm310_vm1, %v790_v19 }
 0x128   : > { %v676_v20 = vpop.permute.xlu1 %675 }
 0x129   : > { %v666_v21 = vpop.permute.xlu0 %665  ;;  %681 = vst.msk [vmem:[#allocation4 + $0x20] sm:$0xff] %vm388_vm7, %v676_v20 }
 0x12a   : > { %v800_v22 = vpop.permute.xlu2 %799  ;;  %670 = vst.msk [vmem:[#allocation4 + $0x30] sm:$0xff] %vm375_vm6, %v666_v21 }
 0x12b   : > { %682 = vst.msk [vmem:[#allocation4 + $0x30] sm:$0xff] %vm388_vm7, %v678_v11 }
 0x130   : > { %v690_v23 = vpop.permute.xlu1 %689 }
 0x131   : > { %v688_v24 = vpop.permute.xlu0 %687  ;;  %694 = vst.msk [vmem:[#allocation4 + $0x30] sm:$0xff] %vm401_vm8, %v690_v23 }
 0x132   : > { %693 = vst.msk [vmem:[#allocation4 + $0x20] sm:$0xff] %vm401_vm8, %v688_v24  ;;  %v726_v25 = vpop.permute.xlu2 %725 }
 0x133   : > { %705 = vst.msk [vmem:[#allocation4 + $0x20] sm:$0xff] %vm2942_vm9, %v700_v16 }
 0x138   : > { %v788_v26 = vpop.permute.xlu1 %787 }
 0x139   : > { %v702_v27 = vpop.permute.xlu0 %701  ;;  %793 = vst.msk [vmem:[#allocation4 + $0x28] sm:$0xff] %vm310_vm1, %v788_v26 }
 0x13a   : > { %706 = vst.msk [vmem:[#allocation4 + $0x30] sm:$0xff] %vm2942_vm9, %v702_v27  ;;  %v736_v28 = vpop.permute.xlu2 %735  ;;  %vm2949_vm9 = vcmask 1048512  }
 0x13b   : > { %805 = vst.msk [vmem:[#allocation4 + $0x28] sm:$0xff] %vm323_vm2, %v800_v22 }
 0x140   : > { %v714_v29 = vpop.permute.xlu1 %713 }
 0x141   : > { %v712_v30 = vpop.permute.xlu0 %711  ;;  %718 = vst.msk [vmem:[#allocation4 + $0x30] sm:$0xff] %vm2941_vm10, %v714_v29 }
 0x142   : > { %717 = vst.msk [vmem:[#allocation4 + $0x20] sm:$0xff] %vm2941_vm10, %v712_v30  ;;  %v826_v32 = vpop.permute.xlu2 %825 }
 0x143   : > { %730 = vst.msk [vmem:[#allocation4 + $0x30] sm:$0xff] %vm2940_vm11, %v726_v25 }
 0x148   : > { %v724_v33 = vpop.permute.xlu1 %723 }
 0x149   : > { %v802_v34 = vpop.permute.xlu0 %801  ;;  %729 = vst.msk [vmem:[#allocation4 + $0x20] sm:$0xff] %vm2940_vm11, %v724_v33  ;;  %vm2947_vm11 = vcmask 982912  }
 0x14a   : > { %806 = vst.msk [vmem:[#allocation4 + $0x38] sm:$0xff] %vm323_vm2, %v802_v34  ;;  %v836_v38 = vpop.permute.xlu2 %835  ;;  %vm2948_vm10 = vmmov %vm2947_vm11 }
 0x14b   : > { %741 = vst.msk [vmem:[#allocation4 + $0x20] sm:$0xff] %vm2943_vm12, %v736_v28  ;;  %vm2945_vm12 = vcmask 917312  }
 0x14c   : > { %vm2946_vm13 = vmmov %vm2945_vm12 }
 0x150   : > { %v814_v35 = vpop.permute.xlu1 %813 }
 0x151   : > { %v812_v36 = vpop.permute.xlu0 %811  ;;  %818 = vst.msk [vmem:[#allocation4 + $0x38] sm:$0xff] %vm336_vm3, %v814_v35 }
 0x152   : > { %817 = vst.msk [vmem:[#allocation4 + $0x28] sm:$0xff] %vm336_vm3, %v812_v36  ;;  %v762_v42 = vpop.permute.xlu2 %761 }
 0x153   : > { %830 = vst.msk [vmem:[#allocation4 + $0x38] sm:$0xff] %vm349_vm4, %v826_v32 }
 0x158   : > { %v824_v39 = vpop.permute.xlu1 %823 }
 0x159   : > { %v738_v41 = vpop.permute.xlu0 %737  ;;  %829 = vst.msk [vmem:[#allocation4 + $0x28] sm:$0xff] %vm349_vm4, %v824_v39 }
 0x15a   : > { %742 = vst.msk [vmem:[#allocation4 + $0x30] sm:$0xff] %vm2944_vm14, %v738_v41  ;;  %v772_v45 = vpop.permute.xlu2 %771  ;;  %vm902_vm14 = vcmp.gt.f32.partialorder %v894_v61, 0.5 }
 0x15b   : > { %841 = vst.msk [vmem:[#allocation4 + $0x28] sm:$0xff] %vm362_vm5, %v836_v38 }
 0x160   : > { %v750_v43 = vpop.permute.xlu1 %749 }
 0x161   : > { %v748_v44 = vpop.permute.xlu0 %747  ;;  %754 = vst.msk [vmem:[#allocation4 + $0x30] sm:$0xff] %vm2945_vm12, %v750_v43  ;;  %vm900_vm12 = vcmp.gt.f32.partialorder %v892_v62, 0.5 }
 0x162   : > { %753 = vst.msk [vmem:[#allocation4 + $0x20] sm:$0xff] %vm2946_vm13, %v748_v44  ;;  %v862_v48 = vpop.permute.xlu2 %861  ;;  %v1039_v6 = vpop.f32.mrf.mxu0 }
 0x163   : > { %766 = vst.msk [vmem:[#allocation4 + $0x30] sm:$0xff] %vm2947_vm11, %v762_v42  ;;  %vm2950_vm11 = vmmov %vm2949_vm9  ;;  %v1040_v9 = vadd.f32 %v2571_v7, %v1039_v6 }
 0x168   : > { %v760_v46 = vpop.permute.xlu1 %759 }
 0x169   : > { %v838_v47 = vpop.permute.xlu0 %837  ;;  %765 = vst.msk [vmem:[#allocation4 + $0x20] sm:$0xff] %vm2948_vm10, %v760_v46  ;;  %vm901_vm10 = vcmp.gt.f32.partialorder %v893_v54, 0.5 }
 0x16a   : > { %842 = vst.msk [vmem:[#allocation4 + $0x38] sm:$0xff] %vm362_vm5, %v838_v47  ;;  %v1041_v13 = vpop.f32.mrf.mxu0 }
 0x16b   : > { %777 = vst.msk [vmem:[#allocation4 + $0x20] sm:$0xff] %vm2949_vm9, %v772_v45  ;;  %vm899_vm9 = vcmp.gt.f32.partialorder %v891_v53, 0.5  ;;  %v1042_v15 = vadd.f32 %v2571_v7, %v1041_v13 }
 0x16c   : > { %vm1994_vm13 = vmpackc.low %vm901_vm10, %vm899_vm9  ;;  %vm2953_vm9 = vcmask 720512   ;;  %vm2954_vm10 = vcmask 786112  }
 0x170   : > { %v850_v49 = vpop.permute.xlu1 %849 }
 0x171   : > { %v848_v50 = vpop.permute.xlu0 %847  ;;  %854 = vst.msk [vmem:[#allocation4 + $0x38] sm:$0xff] %vm375_vm6, %v850_v49 }
 0x172   : > { %853 = vst.msk [vmem:[#allocation4 + $0x28] sm:$0xff] %vm375_vm6, %v848_v50  ;;  %v883_v55 = vld [vmem:[#allocation4 + $0x20] sm:$0xff] }
 0x173   : > { %866 = vst.msk [vmem:[#allocation4 + $0x38] sm:$0xff] %vm388_vm7, %v862_v48 }
 0x178   : > { %v860_v51 = vpop.permute.xlu1 %859 }
 0x179   : > { %v774_v52 = vpop.permute.xlu0 %773  ;;  %865 = vst.msk [vmem:[#allocation4 + $0x28] sm:$0xff] %vm388_vm7, %v860_v51 }
 0x17a   : > { %778 = vst.msk [vmem:[#allocation4 + $0x30] sm:$0xff] %vm2950_vm11, %v774_v52  ;;  %vm2952_vm11 = vcmask 654912  }
 0x180   : > { %v874_v56 = vpop.permute.xlu1 %873 }
 0x181   : > { %v872_v57 = vpop.permute.xlu0 %871  ;;  %878 = vst.msk [vmem:[#allocation4 + $0x38] sm:$0xff] %vm401_vm8, %v874_v56  ;;  %v885_v58 = vld [vmem:[#allocation4 + $0x30] sm:$0xff] }
 0x182   : > { %877 = vst.msk [vmem:[#allocation4 + $0x28] sm:$0xff] %vm401_vm8, %v872_v57  ;;  %v1995_v59 = vpack.c.bf16 %v885_v58, %v883_v55 }
 0x184   : > { %1996 = vmatmul.msk.bf16.gmra.mxu0 %vm1994_vm13, %v1995_v59  ;;  %vm2955_vm13 = vcmask 851712  }
 0x188   : > { %v886_v63 = vld [vmem:[#allocation4 + $0x38] sm:$0xff] }
 0x189   : > { %v884_v2 = vld [vmem:[#allocation4 + $0x28] sm:$0xff]  ;;  %v910_v3 = vsel %vm902_vm14, %v886_v63, 0.0  ;;  %vm2956_vm14 = vmmov %vm2952_vm11 }
 0x18a   : > { %v908_v4 = vsel %vm900_vm12, %v884_v2, 0.0  ;;  %vm2957_vm12 = vmmov %vm2953_vm9 }
 0x18b   : > { %v914_v5 = vpack.c.bf16 %v910_v3, %v908_v4 }
 0x18d   : > { %1998 = vmatmul.msk.bf16.gmra.mxu1 %vm1019_vm15, %v914_v5 }
 0x192   : > { %v1058_v10 = vpop.f32.mrf.mxu1 }
 0x193   : > { %v1059_v11 = vadd.f32 %v1058_v10, %v1040_v9 }
 0x195   : > { %v1072_v12 = vmul.f32 0.044715, %v1059_v11  ;;  %v1068_v27 = vmul.f32 0.5, %v1059_v11 }
 0x197   : > { %v1076_v14 = vmul.f32 %v1072_v12, %v1059_v11 }
 0x199   : > { %v1080_v16 = vmul.f32 %v1076_v14, %v1059_v11 }
 0x19a   : > { %v1060_v17 = vpop.f32.mrf.mxu1 }
 0x19b   : > { %v1084_v18 = vadd.f32 %v1080_v16, %v1059_v11  ;;  %v1061_v19 = vadd.f32 %v1060_v17, %v1042_v15 }
 0x19d   : > { %v1088_v20 = vmul.f32 0.7978846, %v1084_v18  ;;  %v1073_v21 = vmul.f32 0.044715, %v1061_v19  ;;  %v1069_v32 = vmul.f32 0.5, %v1061_v19 }
 0x19f   : > { %2110 = vtanh.f32 %v1088_v20  ;;  %v1077_v22 = vmul.f32 %v1073_v21, %v1061_v19 }
 0x1a1   : > { %v1081_v23 = vmul.f32 %v1077_v22, %v1061_v19  ;;  %v1444_v22 = vld [vmem:[#allocation3 + $0xe] sm:$0xff] }
 0x1a2   : > { %1395 = vst.msk [vmem:[#allocation4 + $0x30] sm:$0xff] %vm291_vm0, %v1444_v22 }
 0x1a3   : > { %v1085_v24 = vadd.f32 %v1081_v23, %v1061_v19 }
 0x1a5   : > { %v2111_v25 = vpop.eup %2110  ;;  %v1089_v26 = vmul.f32 0.7978846, %v1085_v24 }
 0x1a6   : > { %v1096_v28 = vadd.f32 1.0, %v2111_v25 }
 0x1a7   : > { %2112 = vtanh.f32 %v1089_v26 }
 0x1a8   : > { %v1100_v29 = vmul.f32 %v1096_v28, %v1068_v27 }
 0x1aa   : > { %1104 = vst.msk [vmem:[#allocation2 + $0x8] sm:$0xff] %vm291_vm0, %v1100_v29  ;;  %v1396_v29 = vld [vmem:[#allocation3 + $0x7] sm:$0xff] }
 0x1ad   : > { %v2113_v30 = vpop.eup %2112 }
 0x1ae   : > { %v1097_v33 = vadd.f32 1.0, %v2113_v30 }
 0x1b0   : > { %v1101_v34 = vmul.f32 %v1097_v33, %v1069_v32 }
 0x1b1   : > { %v1136_v35 = vld [vmem:[#allocation2 + $0x5] sm:$0xff] }
 0x1b2   : > { %v1124_v36 = vld [vmem:[#allocation2 + $0x4] sm:$0xff]  ;;  %1105 = vst.msk [vmem:[#allocation2 + $0x10] sm:$0xff] %vm291_vm0, %v1101_v34  ;;  %1140 = vrot.lane.b32.xlu0 %v1136_v35, %s2143_s17 }
 0x1b3   : > { %v1112_v38 = vld [vmem:[#allocation2 + $0x3] sm:$0xff]  ;;  %1128 = vrot.lane.b32.xlu1 %v1124_v36, %s2141_s15 }
 0x1b4   : > { %1116 = vrot.lane.b32.xlu2 %v1112_v38, %s2142_s16  ;;  %v1108_v39 = vld [vmem:[#allocation2 + $0x2] sm:$0xff] }
 0x1b5   : > { %1110 = vst.msk [vmem:[#allocation4] sm:$0xff] %vm291_vm0, %v1108_v39  ;;  %v1148_v41 = vld [vmem:[#allocation2 + $0x6] sm:$0xff] }
 0x1b6   : > { %v2591_v45 = vld [vmem:[#allocation2 + $0x8] sm:$0xff] }
 0x1b7   : > { %v1196_v46 = vld [vmem:[#allocation2 + $0x7] sm:$0xff] }
 0x1b8   : > { %v1408_v38 = vld [vmem:[#allocation3 + $0x8] sm:$0xff] }
 0x1b9   : > { %v2585_v42 = vld [vmem:[#allocation2 + $0xa] sm:$0xff]  ;;  %v1297_v52 = vld [vmem:[#allocation2 + $0x12] sm:$0xff] }
 0x1ba   : > { %1176 = vrot.lane.b32.xlu0 %v1136_v35, %s2146_s20  ;;  %v1256_v43 = vld [vmem:[#allocation2 + $0x9] sm:$0xff]  ;;  %v1257_v44 = vld [vmem:[#allocation2 + $0x11] sm:$0xff]  ;;  %1111 = vst.msk [vmem:[#allocation4 + $0x10] sm:$0xff] %vm291_vm0, %v2585_v42 }
 0x1bb   : > { %1164 = vrot.lane.b32.xlu1 %v1124_v36, %s2145_s19  ;;  %1295 = vst.msk [vmem:[#allocation4 + $0x18] sm:$0xff] %vm291_vm0, %v1257_v44  ;;  %v2597_v47 = vld [vmem:[#allocation2 + $0xd] sm:$0xff]  ;;  %v1369_v21 = vld [vmem:[#allocation2 + $0x15] sm:$0xff] }
 0x1bc   : > { %1152 = vrot.lane.b32.xlu2 %v1148_v41, %s2144_s18  ;;  %1294 = vst.msk [vmem:[#allocation4 + $0x8] sm:$0xff] %vm291_vm0, %v1256_v43  ;;  %v1113_v48 = vld [vmem:[#allocation2 + $0xb] sm:$0xff]  ;;  %v1309_v53 = vld [vmem:[#allocation2 + $0x13] sm:$0xff] }
 0x1bd   : > { %v1209_v49 = vld [vmem:[#allocation2 + $0x10] sm:$0xff] }
 0x1be   : > { %v2608_v50 = vld [vmem:[#allocation2 + $0xe] sm:$0xff]  ;;  %v1381_v32 = vld [vmem:[#allocation2 + $0x16] sm:$0xff] }
 0x1bf   : > { %v1125_v51 = vld [vmem:[#allocation2 + $0xc] sm:$0xff]  ;;  %v1321_v55 = vld [vmem:[#allocation2 + $0x14] sm:$0xff] }
 0x1c0   : > { %v1197_v54 = vld [vmem:[#allocation2 + $0xf] sm:$0xff] }
 0x1c1   : > { %v1409_v36 = vld [vmem:[#allocation3 + $0x10] sm:$0xff] }
 0x1c2   : > { %1212 = vrot.lane.b32.xlu0 %v2591_v45, %s2149_s23 }
 0x1c3   : > { %1200 = vrot.lane.b32.xlu1 %v1196_v46, %s2148_s22 }
 0x1c4   : > { %1188 = vrot.lane.b32.xlu2 %v1148_v41, %s2147_s21 }
 0x1ca   : > { %1248 = vrot.lane.b32.xlu0 %v2591_v45, %s2152_s26 }
 0x1cb   : > { %1142 = vrot.lane.b32.xlu1 %v2597_v47, %s2143_s17 }
 0x1cc   : > { %1224 = vrot.lane.b32.xlu2 %v1148_v41, %s2150_s24 }
 0x1d2   : > { %1118 = vrot.lane.b32.xlu0 %v1113_v48, %s2142_s16 }
 0x1d3   : > { %1178 = vrot.lane.b32.xlu1 %v2597_v47, %s2146_s20 }
 0x1d4   : > { %1236 = vrot.lane.b32.xlu2 %v1196_v46, %s2951_s13 }
 0x1da   : > { %1154 = vrot.lane.b32.xlu0 %v2608_v50, %s2144_s18 }
 0x1db   : > { %1214 = vrot.lane.b32.xlu1 %v1209_v49, %s2149_s23 }
 0x1dc   : > { %1130 = vrot.lane.b32.xlu2 %v1125_v51, %s2141_s15 }
 0x1e2   : > { %1190 = vrot.lane.b32.xlu0 %v2608_v50, %s2147_s21 }
 0x1e3   : > { %1302 = vrot.lane.b32.xlu1 %v1297_v52, %s2142_s16 }
 0x1e4   : > { %1166 = vrot.lane.b32.xlu2 %v1125_v51, %s2145_s19 }
 0x1ea   : > { %1300 = vrot.lane.b32.xlu0 %v2585_v42, %s2142_s16 }
 0x1eb   : > { %1314 = vrot.lane.b32.xlu1 %v1309_v53, %s2141_s15 }
 0x1ec   : > { %1202 = vrot.lane.b32.xlu2 %v1197_v54, %s2148_s22 }
 0x1f2   : > { %1312 = vrot.lane.b32.xlu0 %v1113_v48, %s2141_s15 }
 0x1f3   : > { %1324 = vrot.lane.b32.xlu1 %v1125_v51, %s2143_s17 }
 0x1f4   : > { %1226 = vrot.lane.b32.xlu2 %v2608_v50, %s2150_s24 }
 0x1fa   : > { %1238 = vrot.lane.b32.xlu0 %v1197_v54, %s2951_s13 }
 0x1fb   : > { %1250 = vrot.lane.b32.xlu1 %v1209_v49, %s2152_s26 }
 0x1fc   : > { %1326 = vrot.lane.b32.xlu2 %v1321_v55, %s2143_s17 }
 0x201   : > { %v1044_v56 = vpop.f32.mrf.mxu0 }
 0x202   : > { %1338 = vrot.lane.b32.xlu0 %v1297_v52, %s2144_s18  ;;  %v1045_v57 = vadd.f32 %v2571_v7, %v1044_v56 }
 0x203   : > { %1260 = vrot.lane.b32.xlu1 %v1256_v43, %s2153_s27 }
 0x204   : > { %1336 = vrot.lane.b32.xlu2 %v2585_v42, %s2144_s18 }
 0x209   : > { %v1046_v61 = vpop.f32.mrf.mxu0 }
 0x20a   : > { %v1063_v58 = vpop.f32.mrf.mxu1  ;;  %1348 = vrot.lane.b32.xlu0 %v1113_v48, %s2145_s19  ;;  %v1047_v3 = vadd.f32 %v2571_v7, %v1046_v61 }
 0x20b   : > { %1350 = vrot.lane.b32.xlu1 %v1309_v53, %s2145_s19  ;;  %v1064_v59 = vadd.f32 %v1063_v58, %v1045_v57 }
 0x20c   : > { %1262 = vrot.lane.b32.xlu2 %v1257_v44, %s2153_s27 }
 0x20d   : > { %v1074_v62 = vmul.f32 0.044715, %v1064_v59  ;;  %v1070_v18 = vmul.f32 0.5, %v1064_v59 }
 0x20e   : > { %v1117_v63 = vpop.permute.xlu2 %1116 }
 0x20f   : > { %1122 = vst.msk [vmem:[#allocation4] sm:$0xff] %vm310_vm1, %v1117_v63  ;;  %v1078_v2 = vmul.f32 %v1074_v62, %v1064_v59 }
 0x211   : > { %v1082_v4 = vmul.f32 %v1078_v2, %v1064_v59  ;;  %v2079_v2 = vld [vmem:[%s2927_s4 + $0x38] sm:$0xff] }
 0x212   : > { %v1065_v5 = vpop.f32.mrf.mxu1  ;;  %1274 = vrot.lane.b32.xlu0 %v1297_v52, %s2154_s28  ;;  %1825 = vmatpush.bf16.msra.mxu2 %v2079_v2 }
 0x213   : > { %1360 = vrot.lane.b32.xlu1 %v1125_v51, %s2146_s20  ;;  %v1086_v6 = vadd.f32 %v1082_v4, %v1064_v59  ;;  %v1066_v9 = vadd.f32 %v1065_v5, %v1047_v3  ;;  %v2078_v5 = vld [vmem:[%s2927_s4 + $0x30] sm:$0xff] }
 0x214   : > { %1272 = vrot.lane.b32.xlu2 %v2585_v42, %s2154_s28 }
 0x215   : > { %v1090_v10 = vmul.f32 0.7978846, %v1086_v6  ;;  %v1075_v11 = vmul.f32 0.044715, %v1066_v9  ;;  %v1071_v27 = vmul.f32 0.5, %v1066_v9 }
 0x216   : > { %v1153_v12 = vpop.permute.xlu2 %1152  ;;  %1826 = vmatpush.bf16.msra.mxu2 %v2078_v5 }
 0x217   : > { %2114 = vtanh.f32 %v1090_v10  ;;  %v1079_v13 = vmul.f32 %v1075_v11, %v1066_v9 }
 0x219   : > { %v1083_v14 = vmul.f32 %v1079_v13, %v1066_v9  ;;  %v2076_v13 = vld [vmem:[%s2927_s4 + $0x20] sm:$0xff] }
 0x21a   : > { %1284 = vrot.lane.b32.xlu0 %v2591_v45, %s2155_s29 }
 0x21b   : > { %1286 = vrot.lane.b32.xlu1 %v1209_v49, %s2155_s29  ;;  %v1087_v7 = vadd.f32 %v1083_v14, %v1066_v9  ;;  %v1456_v49 = vld [vmem:[#allocation3 + $0xf] sm:$0xff] }
 0x21c   : > { %1362 = vrot.lane.b32.xlu2 %v1321_v55, %s2146_s20 }
 0x21d   : > { %v2115_v15 = vpop.eup %2114  ;;  %v1091_v16 = vmul.f32 0.7978846, %v1087_v7 }
 0x21e   : > { %v1189_v17 = vpop.permute.xlu2 %1188  ;;  %v1098_v19 = vadd.f32 1.0, %v2115_v15 }
 0x21f   : > { %2116 = vtanh.f32 %v1091_v16  ;;  %v2075_v16 = vld [vmem:[%s2927_s4 + $0x18] sm:$0xff] }
 0x220   : > { %v1102_v20 = vmul.f32 %v1098_v19, %v1070_v18  ;;  %v2074_v18 = vld [vmem:[%s2927_s4 + $0x10] sm:$0xff] }
 0x222   : > { %1106 = vst.msk [vmem:[#allocation3 + $0x18] sm:$0xff] %vm291_vm0, %v1102_v20  ;;  %1374 = vrot.lane.b32.xlu0 %v1369_v21, %s2147_s21  ;;  %v1736_v21 = vld [vmem:[%s2927_s4 + $0x60] sm:$0xf] }
 0x223   : > { %1384 = vrot.lane.b32.xlu1 %v2608_v50, %s2148_s22 }
 0x224   : > { %1372 = vrot.lane.b32.xlu2 %v2597_v47, %s2147_s21  ;;  %v1141_v23 = vpop.permute.xlu0 %1140 }
 0x225   : > { %v1129_v24 = vpop.permute.xlu1 %1128  ;;  %v2117_v25 = vpop.eup %2116 }
 0x226   : > { %1134 = vst.msk [vmem:[#allocation4] sm:$0xff] %vm323_vm2, %v1129_v24  ;;  %v1225_v26 = vpop.permute.xlu2 %1224  ;;  %v1099_v28 = vadd.f32 1.0, %v2117_v25  ;;  %v2073_v24 = vld [vmem:[%s2927_s4 + $0x8] sm:$0xff] }
 0x227   : > { %1146 = vst.msk [vmem:[#allocation4] sm:$0xff] %vm336_vm3, %v1141_v23  ;;  %v1790_v23 = vunpack.c.l.b16 %v1736_v21  ;;  %v2770_v25 = vld [vmem:[#allocation3 + $0x2a] sm:$0xff] }
 0x228   : > { %1158 = vst.msk [vmem:[#allocation4] sm:$0xff] %vm349_vm4, %v1153_v12  ;;  %v1103_v30 = vmul.f32 %v1099_v28, %v1071_v27 }
 0x229   : > { %v1433_v44 = vld [vmem:[#allocation3 + $0x12] sm:$0xff] }
 0x22a   : > { %1107 = vst.msk [vmem:[#allocation3 + $0x20] sm:$0xff] %vm291_vm0, %v1103_v30  ;;  %1400 = vrot.lane.b32.xlu0 %v1396_v29, %s2142_s16  ;;  %v1421_v45 = vld [vmem:[#allocation3 + $0x11] sm:$0xff]  ;;  %v2072_v30 = vld [vmem:[%s2927_s4] sm:$0xff] }
 0x22b   : > { %1402 = vrot.lane.b32.xlu1 %v2311_v31, %s2142_s16  ;;  %v1445_v50 = vld [vmem:[#allocation3 + $0x16] sm:$0xff] }
 0x22c   : > { %1386 = vrot.lane.b32.xlu2 %v1381_v32, %s2148_s22  ;;  %v1177_v33 = vpop.permute.xlu0 %1176  ;;  %v2691_v54 = vld [vmem:[#allocation3 + $0x18] sm:$0xff] }
 0x22d   : > { %v1165_v34 = vpop.permute.xlu1 %1164  ;;  %v1457_v55 = vld [vmem:[#allocation3 + $0x17] sm:$0xff] }
 0x22e   : > { %1170 = vst.msk [vmem:[#allocation4] sm:$0xff] %vm362_vm5, %v1165_v34  ;;  %v1237_v35 = vpop.permute.xlu2 %1236  ;;  %v2083_v29 = vld [vmem:[%s2927_s4 + $0x58] sm:$0xff] }
 0x22f   : > { %1182 = vst.msk [vmem:[#allocation4] sm:$0xff] %vm375_vm6, %v1177_v33 }
 0x230   : > { %1194 = vst.msk [vmem:[#allocation4] sm:$0xff] %vm388_vm7, %v1189_v17  ;;  %v2751_v17 = vld [vmem:[#allocation3 + $0x29] sm:$0xff] }
 0x231   : > { %v2668_v31 = vld [vmem:[#allocation3 + $0x1f] sm:$0xff]  ;;  %v2671_v39 = vld [vmem:[#allocation3 + $0x27] sm:$0xff] }
 0x232   : > { %1414 = vrot.lane.b32.xlu0 %v1409_v36, %s2141_s15  ;;  %1578 = vst.msk [vmem:[#allocation4 + $0x28] sm:$0xff] %vm291_vm0, %v2668_v31  ;;  %v2700_v59 = vld [vmem:[#allocation3 + $0x19] sm:$0xff]  ;;  %v2733_v11 = vld [vmem:[#allocation3 + $0x21] sm:$0xff] }
 0x233   : > { %1424 = vrot.lane.b32.xlu1 %v2320_v37, %s2143_s17  ;;  %1579 = vst.msk [vmem:[#allocation4 + $0x38] sm:$0xff] %vm291_vm0, %v2671_v39  ;;  %v1432_v37 = vld [vmem:[#allocation3 + $0xa] sm:$0xff]  ;;  %v2714_v3 = vld [vmem:[#allocation3 + $0x20] sm:$0xff] }
 0x234   : > { %1412 = vrot.lane.b32.xlu2 %v1408_v38, %s2141_s15  ;;  %v1213_v41 = vpop.permute.xlu0 %1212  ;;  %v2720_v4 = vld [vmem:[#allocation3 + $0x1a] sm:$0xff]  ;;  %v1604_v28 = vld [vmem:[#allocation3 + $0x22] sm:$0xff] }
 0x235   : > { %v1201_v42 = vpop.permute.xlu1 %1200  ;;  %v2735_v12 = vld [vmem:[#allocation3 + $0x1e] sm:$0xff]  ;;  %v2081_v38 = vld [vmem:[%s2927_s4 + $0x48] sm:$0xff] }
 0x236   : > { %1206 = vst.msk [vmem:[#allocation4] sm:$0xff] %vm401_vm8, %v1201_v42  ;;  %v1131_v43 = vpop.permute.xlu2 %1130 }
 0x237   : > { %1218 = vst.msk [vmem:[#allocation4] sm:$0xff] %vm2952_vm11, %v1213_v41  ;;  %vm2958_vm11 = vmmov %vm2954_vm10 }
 0x238   : > { %1230 = vst.msk [vmem:[#allocation4] sm:$0xff] %vm2953_vm9, %v1225_v26  ;;  %vm2959_vm9 = vmmov %vm2955_vm13  ;;  %v1803_v26 = vpack.c.b16 %v1790_v23, %v1790_v23 }
 0x239   : > { %1242 = vst.msk [vmem:[#allocation4] sm:$0xff] %vm2954_vm10, %v1237_v35  ;;  %vm2960_vm10 = vcmask 917312   ;;  %v2082_v35 = vld [vmem:[%s2927_s4 + $0x50] sm:$0xff] }
 0x23a   : > { %1436 = vrot.lane.b32.xlu0 %v1432_v37, %s2144_s18 }
 0x23b   : > { %1438 = vrot.lane.b32.xlu1 %v1433_v44, %s2144_s18 }
 0x23c   : > { %1426 = vrot.lane.b32.xlu2 %v1421_v45, %s2143_s17  ;;  %v1249_v46 = vpop.permute.xlu0 %1248 }
 0x23d   : > { %v1143_v47 = vpop.permute.xlu1 %1142  ;;  %1254 = vst.msk [vmem:[#allocation4] sm:$0xff] %vm2955_vm13, %v1249_v46  ;;  %vm2961_vm13 = vcmask 1043456   ;;  %v1629_v46 = vld [vmem:[#allocation3 + $0x2f] sm:$0xff] }
 0x23e   : > { %v1167_v48 = vpop.permute.xlu2 %1166  ;;  %v1823_v27 = vsel %vm2961_vm13, %v1803_v26, 0 }
 0x23f   : > { %1847 = vmatpush.bf16.msra.mxu3 %v1823_v27 }
 0x242   : > { %1450 = vrot.lane.b32.xlu0 %v1445_v50, %s2145_s19 }
 0x243   : > { %1460 = vrot.lane.b32.xlu1 %v1456_v49, %s2146_s20  ;;  %1848 = vmatpush.bf16.msra.mxu3 %v2083_v29  ;;  %v1641_v49 = vld [vmem:[#allocation3 + $0x30] sm:$0xff] }
 0x244   : > { %1448 = vrot.lane.b32.xlu2 %v1444_v22, %s2145_s19  ;;  %v1119_v52 = vpop.permute.xlu0 %1118 }
 0x245   : > { %v1179_v51 = vpop.permute.xlu1 %1178  ;;  %1123 = vst.msk [vmem:[#allocation4 + $0x10] sm:$0xff] %vm310_vm1, %v1119_v52  ;;  %v1640_v52 = vld [vmem:[#allocation3 + $0x28] sm:$0xff] }
 0x246   : > { %v1203_v53 = vpop.permute.xlu2 %1202  ;;  %1135 = vst.msk [vmem:[#allocation4 + $0x10] sm:$0xff] %vm323_vm2, %v1131_v43  ;;  %v1392_v43 = vld [vmem:[#allocation3 + $0x6] sm:$0xff] }
 0x247   : > { %1147 = vst.msk [vmem:[#allocation4 + $0x10] sm:$0xff] %vm336_vm3, %v1143_v47  ;;  %1849 = vmatpush.bf16.msra.mxu3 %v2082_v35 }
 0x248   : > { %1394 = vst.msk [vmem:[#allocation4 + $0x20] sm:$0xff] %vm291_vm0, %v1392_v43 }
 0x24a   : > { %1472 = vrot.lane.b32.xlu0 %v1409_v36, %s2147_s21  ;;  %v1616_v36 = vld [vmem:[#allocation3 + $0x26] sm:$0xff] }
 0x24b   : > { %1474 = vrot.lane.b32.xlu1 %v2691_v54, %s2147_s21  ;;  %1850 = vmatpush.bf16.msra.mxu3 %v2081_v38 }
 0x24c   : > { %1462 = vrot.lane.b32.xlu2 %v1457_v55, %s2146_s20  ;;  %v1155_v57 = vpop.permute.xlu0 %1154 }
 0x24d   : > { %v1215_v56 = vpop.permute.xlu1 %1214  ;;  %1159 = vst.msk [vmem:[#allocation4 + $0x10] sm:$0xff] %vm349_vm4, %v1155_v57 }
 0x24e   : > { %v1227_v58 = vpop.permute.xlu2 %1226  ;;  %1171 = vst.msk [vmem:[#allocation4 + $0x10] sm:$0xff] %vm362_vm5, %v1167_v48 }
 0x24f   : > { %1183 = vst.msk [vmem:[#allocation4 + $0x10] sm:$0xff] %vm375_vm6, %v1179_v51  ;;  %v1686_v51 = vld [vmem:[%s2930_s7 + $0x10] sm:$0xff] }
 0x252   : > { %1486 = vrot.lane.b32.xlu0 %v2700_v59, %s2148_s22 }
 0x253   : > { %1496 = vrot.lane.b32.xlu1 %v1433_v44, %s2149_s23 }
 0x254   : > { %1484 = vrot.lane.b32.xlu2 %v1421_v45, %s2148_s22  ;;  %v1191_v62 = vpop.permute.xlu0 %1190 }
 0x255   : > { %v1303_v61 = vpop.permute.xlu1 %1302  ;;  %1195 = vst.msk [vmem:[#allocation4 + $0x10] sm:$0xff] %vm388_vm7, %v1191_v62 }
 0x256   : > { %1307 = vst.msk [vmem:[#allocation4 + $0x18] sm:$0xff] %vm310_vm1, %v1303_v61  ;;  %v1327_v63 = vpop.permute.xlu2 %1326  ;;  %v1687_v61 = vld [vmem:[%s2930_s7 + $0x18] sm:$0xff] }
 0x257   : > { %1207 = vst.msk [vmem:[#allocation4 + $0x10] sm:$0xff] %vm401_vm8, %v1203_v53 }
 0x258   : > { %1219 = vst.msk [vmem:[#allocation4 + $0x10] sm:$0xff] %vm2956_vm14, %v1215_v56  ;;  %vm2962_vm14 = vmmov %vm2960_vm10 }
 0x259   : > { %1231 = vst.msk [vmem:[#allocation4 + $0x10] sm:$0xff] %vm2957_vm12, %v1227_v58  ;;  %vm2963_vm12 = vcmask 982912  }
 0x25a   : > { %1584 = vrot.lane.b32.xlu0 %v2714_v3, %s2142_s16 }
 0x25b   : > { %1586 = vrot.lane.b32.xlu1 %v2391_v8, %s2142_s16  ;;  %v2077_v8 = vld [vmem:[%s2927_s4 + $0x28] sm:$0xff]  ;;  %s1864_s16 = sld [smem:[#allocation6 + %s2055_s30]] }
 0x25c   : > { %1498 = vrot.lane.b32.xlu2 %v2720_v4, %s2149_s23  ;;  %v1301_v9 = vpop.permute.xlu0 %1300  ;;  %1827 = vmatpush.bf16.msra.mxu2 %v2077_v8 }
 0x25d   : > { %v1315_v6 = vpop.permute.xlu1 %1314  ;;  %1306 = vst.msk [vmem:[#allocation4 + $0x8] sm:$0xff] %vm310_vm1, %v1301_v9  ;;  %v1665_v9 = vld [vmem:[#allocation3 + $0x32] sm:$0xff] }
 0x25e   : > { %1319 = vst.msk [vmem:[#allocation4 + $0x18] sm:$0xff] %vm323_vm2, %v1315_v6  ;;  %v1337_v10 = vpop.permute.xlu2 %1336 }
 0x25f   : > { %1331 = vst.msk [vmem:[#allocation4 + $0x18] sm:$0xff] %vm336_vm3, %v1327_v63 }
 0x260   : > { %1828 = vmatpush.bf16.msra.mxu2 %v2076_v13 }
 0x262   : > { %1510 = vrot.lane.b32.xlu0 %v2735_v12, %s2150_s24 }
 0x263   : > { %1596 = vrot.lane.b32.xlu1 %v2733_v11, %s2141_s15 }
 0x264   : > { %1508 = vrot.lane.b32.xlu2 %v1445_v50, %s2150_s24  ;;  %v1313_v7 = vpop.permute.xlu0 %1312  ;;  %1829 = vmatpush.bf16.msra.mxu2 %v2075_v16  ;;  %v1684_v50 = vld [vmem:[%s2930_s7] sm:$0xff] }
 0x265   : > { %v1325_v14 = vpop.permute.xlu1 %1324  ;;  %1318 = vst.msk [vmem:[#allocation4 + $0x8] sm:$0xff] %vm323_vm2, %v1313_v7  ;;  %vm1692_vm13 = vcmp.gt.f32.partialorder %v1684_v50, 0.5 }
 0x266   : > { %v1263_v15 = vpop.permute.xlu2 %1262  ;;  %1330 = vst.msk [vmem:[#allocation4 + $0x8] sm:$0xff] %vm336_vm3, %v1325_v14 }
 0x267   : > { %1342 = vst.msk [vmem:[#allocation4 + $0x8] sm:$0xff] %vm349_vm4, %v1337_v10 }
 0x268   : > { %1830 = vmatpush.bf16.msra.mxu2 %v2074_v18 }
 0x26a   : > { %1520 = vrot.lane.b32.xlu0 %v1457_v55, %s2951_s13 }
 0x26b   : > { %1522 = vrot.lane.b32.xlu1 %v2668_v31, %s2951_s13 }
 0x26c   : > { %1598 = vrot.lane.b32.xlu2 %v2751_v17, %s2141_s15  ;;  %v1239_v20 = vpop.permute.xlu0 %1238  ;;  %1831 = vmatpush.bf16.msra.mxu2 %v2073_v24 }
 0x26d   : > { %v1251_v19 = vpop.permute.xlu1 %1250  ;;  %1243 = vst.msk [vmem:[#allocation4 + $0x10] sm:$0xff] %vm2958_vm11, %v1239_v20  ;;  %vm2964_vm11 = vmmov %vm2963_vm12 }
 0x26e   : > { %v1273_v22 = vpop.permute.xlu2 %1272  ;;  %1255 = vst.msk [vmem:[#allocation4 + $0x10] sm:$0xff] %vm2959_vm9, %v1251_v19  ;;  %vm2965_vm9 = vcmask 1048512  }
 0x26f   : > { %1267 = vst.msk [vmem:[#allocation4 + $0x10] sm:$0xff] %vm2960_vm10, %v1263_v15  ;;  %vm2966_vm10 = vmmov %vm2965_vm9 }
 0x270   : > { %1832 = vmatpush.bf16.msra.mxu2 %v2072_v30 }
 0x272   : > { %1610 = vrot.lane.b32.xlu0 %v2770_v25, %s2143_s17 }
 0x273   : > { %1532 = vrot.lane.b32.xlu1 %v2691_v54, %s2152_s26 }
 0x274   : > { %1608 = vrot.lane.b32.xlu2 %v1604_v28, %s2143_s17  ;;  %v1339_v33 = vpop.permute.xlu0 %1338 }
 0x275   : > { %v1261_v32 = vpop.permute.xlu1 %1260  ;;  %1343 = vst.msk [vmem:[#allocation4 + $0x18] sm:$0xff] %vm349_vm4, %v1339_v33 }
 0x276   : > { %1266 = vst.msk [vmem:[#allocation4] sm:$0xff] %vm2962_vm14, %v1261_v32  ;;  %v1363_v34 = vpop.permute.xlu2 %1362  ;;  %vm1694_vm14 = vcmp.gt.f32.partialorder %v1686_v51, 0.5 }
 0x277   : > { %1278 = vst.msk [vmem:[#allocation4] sm:$0xff] %vm2963_vm12, %v1273_v22  ;;  %vm2047_vm12 = vmpackc.low %vm1694_vm14, %vm1692_vm13  ;;  %vm2968_vm13 = vcmask 720512  }
 0x27a   : > { %1620 = vrot.lane.b32.xlu0 %v1616_v36, %s2144_s18 }
 0x27b   : > { %1622 = vrot.lane.b32.xlu1 %v2448_v40, %s2144_s18  ;;  %v2080_v40 = vld [vmem:[%s2927_s4 + $0x40] sm:$0xff] }
 0x27c   : > { %1534 = vrot.lane.b32.xlu2 %v2714_v3, %s2152_s26  ;;  %v1349_v41 = vpop.permute.xlu0 %1348  ;;  %1851 = vmatpush.bf16.msra.mxu3 %v2080_v40  ;;  %s1870_s26 = sadd.s32 1, %s2055_s30 }
 0x27d   : > { %v1351_v31 = vpop.permute.xlu1 %1350  ;;  %1354 = vst.msk [vmem:[#allocation4 + $0x8] sm:$0xff] %vm362_vm5, %v1349_v41 }
 0x27e   : > { %1355 = vst.msk [vmem:[#allocation4 + $0x18] sm:$0xff] %vm362_vm5, %v1351_v31  ;;  %v1373_v42 = vpop.permute.xlu2 %1372 }
 0x27f   : > { %1367 = vst.msk [vmem:[#allocation4 + $0x18] sm:$0xff] %vm375_vm6, %v1363_v34 }
 0x282   : > { %1546 = vrot.lane.b32.xlu0 %v2733_v11, %s2153_s27 }
 0x283   : > { %1632 = vrot.lane.b32.xlu1 %v2671_v39, %s2145_s19 }
 0x284   : > { %1544 = vrot.lane.b32.xlu2 %v2700_v59, %s2153_s27  ;;  %v1275_v44 = vpop.permute.xlu0 %1274  ;;  %v1685_v59 = vld [vmem:[%s2930_s7 + $0x8] sm:$0xff]  ;;  %s1871_s27 = sld [smem:[#allocation6 + %s1870_s26]] }
 0x285   : > { %v1361_v37 = vpop.permute.xlu1 %1360  ;;  %1279 = vst.msk [vmem:[#allocation4 + $0x10] sm:$0xff] %vm2964_vm11, %v1275_v44  ;;  %vm1693_vm11 = vcmp.gt.f32.partialorder %v1685_v59, 0.5 }
 0x286   : > { %1366 = vst.msk [vmem:[#allocation4 + $0x8] sm:$0xff] %vm375_vm6, %v1361_v37  ;;  %v1387_v45 = vpop.permute.xlu2 %1386 }
 0x287   : > { %1378 = vst.msk [vmem:[#allocation4 + $0x8] sm:$0xff] %vm388_vm7, %v1373_v42 }
 0x28a   : > { %1556 = vrot.lane.b32.xlu0 %v2720_v4, %s2154_s28 }
 0x28b   : > { %1558 = vrot.lane.b32.xlu1 %v1604_v28, %s2154_s28 }
 0x28c   : > { %1634 = vrot.lane.b32.xlu2 %v1629_v46, %s2145_s19  ;;  %v1285_v47 = vpop.permute.xlu0 %1284  ;;  %v1688_v46 = vld [vmem:[%s2930_s7 + $0x20] sm:$0xff]  ;;  %s287_s19 = scalar_lea.vmem %s2931_s8, %s2981_s10 }
 0x28d   : > { %v1287_v39 = vpop.permute.xlu1 %1286  ;;  %1290 = vst.msk [vmem:[#allocation4] sm:$0xff] %vm2966_vm10, %v1285_v47  ;;  %vm2967_vm10 = vcmask 654912  }
 0x28e   : > { %1291 = vst.msk [vmem:[#allocation4 + $0x10] sm:$0xff] %vm2965_vm9, %v1287_v39  ;;  %v1413_v48 = vpop.permute.xlu2 %1412  ;;  %vm1695_vm9 = vcmp.gt.f32.partialorder %v1687_v61, 0.5  ;;  %vm2969_vm14 = vmmov %vm2967_vm10  ;;  %v1690_v39 = vld [vmem:[%s2930_s7 + $0x30] sm:$0xff] }
 0x292   : > { %1646 = vrot.lane.b32.xlu0 %v1641_v49, %s2146_s20 }
 0x293   : > { %1568 = vrot.lane.b32.xlu1 %v2735_v12, %s2155_s29 }
 0x294   : > { %1644 = vrot.lane.b32.xlu2 %v1640_v52, %s2146_s20  ;;  %v1375_v54 = vpop.permute.xlu0 %1374  ;;  %v1676_v57 = vld [vmem:[#allocation4] sm:$0xff] }
 0x295   : > { %v1385_v53 = vpop.permute.xlu1 %1384  ;;  %v1678_v55 = vld [vmem:[#allocation4 + $0x10] sm:$0xff]  ;;  %1379 = vst.msk [vmem:[#allocation4 + $0x18] sm:$0xff] %vm388_vm7, %v1375_v54  ;;  %v1689_v54 = vld [vmem:[%s2930_s7 + $0x28] sm:$0xff] }
 0x296   : > { %1390 = vst.msk [vmem:[#allocation4 + $0x8] sm:$0xff] %vm401_vm8, %v1385_v53  ;;  %v1427_v56 = vpop.permute.xlu2 %1426  ;;  %v2048_v58 = vpack.c.bf16 %v1678_v55, %v1676_v57  ;;  %v1691_v55 = vld [vmem:[%s2930_s7 + $0x38] sm:$0xff] }
 0x297   : > { %1391 = vst.msk [vmem:[#allocation4 + $0x18] sm:$0xff] %vm401_vm8, %v1387_v45 }
 0x298   : > { %2049 = vmatmul.msk.bf16.vlgmr.msra.gmra.mxu2 %vm2047_vm12, %v2048_v58  ;;  %vm2970_vm12 = vmmov %vm2968_vm13 }
 0x29a   : > { %1656 = vrot.lane.b32.xlu0 %v2751_v17, %s2147_s21 }
 0x29b   : > { %1658 = vrot.lane.b32.xlu1 %v2493_v60, %s2147_s21 }
 0x29c   : > { %1570 = vrot.lane.b32.xlu2 %v1616_v36, %s2155_s29  ;;  %v1401_v63 = vpop.permute.xlu0 %1400 }
 0x29d   : > { %v1403_v62 = vpop.permute.xlu1 %1402  ;;  %v1677_v2 = vld [vmem:[#allocation4 + $0x8] sm:$0xff]  ;;  %1406 = vst.msk [vmem:[#allocation4 + $0x20] sm:$0xff] %vm310_vm1, %v1401_v63 }
 0x29e   : > { %1407 = vst.msk [vmem:[#allocation4 + $0x30] sm:$0xff] %vm310_vm1, %v1403_v62  ;;  %v1449_v3 = vpop.permute.xlu2 %1448  ;;  %v1701_v4 = vsel %vm1693_vm11, %v1677_v2, 0.0  ;;  %v1679_v5 = vld [vmem:[#allocation4 + $0x18] sm:$0xff]  ;;  %vm2971_vm11 = vcmask 786112  }
 0x29f   : > { %1418 = vst.msk [vmem:[#allocation4 + $0x20] sm:$0xff] %vm323_vm2, %v1413_v48  ;;  %v1703_v6 = vsel %vm1695_vm9, %v1679_v5, 0.0  ;;  %vm2972_vm9 = vcmask 851712  }
 0x2a0   : > { %v1709_v10 = vpack.c.bf16 %v1703_v6, %v1701_v4 }
 0x2a2   : > { %2053 = vmatmul.msk.bf16.vlgmr.msra.gmra.mxu3 %vm1019_vm15, %v1709_v10  ;;  %1670 = vrot.lane.b32.xlu0 %v1665_v9, %s2148_s22  ;;  %v1865_v10 = vstv %s1864_s16 }
 0x2a4   : > { %1668 = vrot.lane.b32.xlu2 %v2770_v25, %s2148_s22  ;;  %v1415_v8 = vpop.permute.xlu0 %1414 }
 0x2a5   : > { %v1425_v60 = vpop.permute.xlu1 %1424  ;;  %1419 = vst.msk [vmem:[#allocation4 + $0x30] sm:$0xff] %vm323_vm2, %v1415_v8 }
 0x2a6   : > { %1430 = vst.msk [vmem:[#allocation4 + $0x20] sm:$0xff] %vm336_vm3, %v1425_v60  ;;  %v1463_v11 = vpop.permute.xlu2 %1462 }
 0x2a7   : > { %1431 = vst.msk [vmem:[#allocation4 + $0x30] sm:$0xff] %vm336_vm3, %v1427_v56 }
 0x2ac   : > { %v1437_v13 = vpop.permute.xlu0 %1436 }
 0x2ad   : > { %v1439_v12 = vpop.permute.xlu1 %1438  ;;  %1442 = vst.msk [vmem:[#allocation4 + $0x20] sm:$0xff] %vm349_vm4, %v1437_v13 }
 0x2ae   : > { %1443 = vst.msk [vmem:[#allocation4 + $0x30] sm:$0xff] %vm349_vm4, %v1439_v12  ;;  %v1485_v14 = vpop.permute.xlu2 %1484  ;;  %v1872_v12 = vstv %s1871_s27 }
 0x2af   : > { %1454 = vst.msk [vmem:[#allocation4 + $0x20] sm:$0xff] %vm362_vm5, %v1449_v3  ;;  %v2109_v3 = vld [vmem:[%s2928_s5] ss:$0 sm:$0xff] }
 0x2b4   : > { %v1451_v15 = vpop.permute.xlu0 %1450 }
 0x2b5   : > { %v1461_v7 = vpop.permute.xlu1 %1460  ;;  %1455 = vst.msk [vmem:[#allocation4 + $0x30] sm:$0xff] %vm362_vm5, %v1451_v15 }
 0x2b6   : > { %1466 = vst.msk [vmem:[#allocation4 + $0x20] sm:$0xff] %vm375_vm6, %v1461_v7  ;;  %v1499_v16 = vpop.permute.xlu2 %1498 }
 0x2b7   : > { %1467 = vst.msk [vmem:[#allocation4 + $0x30] sm:$0xff] %vm375_vm6, %v1463_v11 }
 0x2bc   : > { %v1473_v18 = vpop.permute.xlu0 %1472 }
 0x2bd   : > { %v1475_v17 = vpop.permute.xlu1 %1474  ;;  %1478 = vst.msk [vmem:[#allocation4 + $0x20] sm:$0xff] %vm388_vm7, %v1473_v18 }
 0x2be   : > { %1479 = vst.msk [vmem:[#allocation4 + $0x30] sm:$0xff] %vm388_vm7, %v1475_v17  ;;  %v1509_v19 = vpop.permute.xlu2 %1508 }
 0x2bf   : > { %1490 = vst.msk [vmem:[#allocation4 + $0x20] sm:$0xff] %vm401_vm8, %v1485_v14 }
 0x2c4   : > { %v1487_v21 = vpop.permute.xlu0 %1486 }
 0x2c5   : > { %v1497_v20 = vpop.permute.xlu1 %1496  ;;  %1491 = vst.msk [vmem:[#allocation4 + $0x30] sm:$0xff] %vm401_vm8, %v1487_v21 }
 0x2c6   : > { %1502 = vst.msk [vmem:[#allocation4 + $0x20] sm:$0xff] %vm2967_vm10, %v1497_v20  ;;  %v1599_v22 = vpop.permute.xlu2 %1598  ;;  %vm2973_vm10 = vmmov %vm2971_vm11 }
 0x2c7   : > { %1514 = vst.msk [vmem:[#allocation4 + $0x20] sm:$0xff] %vm2968_vm13, %v1509_v19  ;;  %vm2975_vm13 = vcmask 917312  }
 0x2c8   : > { %1503 = vst.msk [vmem:[#allocation4 + $0x30] sm:$0xff] %vm2969_vm14, %v1499_v16  ;;  %vm2978_vm14 = vcmask 1048512  }
 0x2cc   : > { %v1585_v24 = vpop.permute.xlu0 %1584 }
 0x2cd   : > { %v1587_v23 = vpop.permute.xlu1 %1586  ;;  %1590 = vst.msk [vmem:[#allocation4 + $0x28] sm:$0xff] %vm310_vm1, %v1585_v24 }
 0x2ce   : > { %1591 = vst.msk [vmem:[#allocation4 + $0x38] sm:$0xff] %vm310_vm1, %v1587_v23  ;;  %v1609_v25 = vpop.permute.xlu2 %1608  ;;  %vm2974_vm1 = vmmov %vm2972_vm9 }
 0x2cf   : > { %1603 = vst.msk [vmem:[#allocation4 + $0x38] sm:$0xff] %vm323_vm2, %v1599_v22 }
 0x2d4   : > { %v1511_v27 = vpop.permute.xlu0 %1510 }
 0x2d5   : > { %v1597_v26 = vpop.permute.xlu1 %1596  ;;  %1515 = vst.msk [vmem:[#allocation4 + $0x30] sm:$0xff] %vm2970_vm12, %v1511_v27 }
 0x2d6   : > { %1602 = vst.msk [vmem:[#allocation4 + $0x28] sm:$0xff] %vm323_vm2, %v1597_v26  ;;  %v1535_v28 = vpop.permute.xlu2 %1534  ;;  %vm2976_vm2 = vmmov %vm2975_vm13 }
 0x2d7   : > { %1614 = vst.msk [vmem:[#allocation4 + $0x28] sm:$0xff] %vm336_vm3, %v1609_v25 }
 0x2dc   : > { %v1521_v30 = vpop.permute.xlu0 %1520 }
 0x2dd   : > { %v1523_v29 = vpop.permute.xlu1 %1522  ;;  %1526 = vst.msk [vmem:[#allocation4 + $0x20] sm:$0xff] %vm2973_vm10, %v1521_v30  ;;  %vm1699_vm10 = vcmp.gt.f32.partialorder %v1691_v55, 0.5 }
 0x2de   : > { %1527 = vst.msk [vmem:[#allocation4 + $0x30] sm:$0xff] %vm2971_vm11, %v1523_v29  ;;  %v1545_v32 = vpop.permute.xlu2 %1544  ;;  %vm1698_vm11 = vcmp.gt.f32.partialorder %v1690_v39, 0.5 }
 0x2df   : > { %1539 = vst.msk [vmem:[#allocation4 + $0x30] sm:$0xff] %vm2972_vm9, %v1535_v28 }
 0x2e4   : > { %v1611_v34 = vpop.permute.xlu0 %1610 }
 0x2e5   : > { %v1533_v33 = vpop.permute.xlu1 %1532  ;;  %1615 = vst.msk [vmem:[#allocation4 + $0x38] sm:$0xff] %vm336_vm3, %v1611_v34  ;;  %vm2977_vm3 = vcmask 982912  }
 0x2e6   : > { %1538 = vst.msk [vmem:[#allocation4 + $0x20] sm:$0xff] %vm2974_vm1, %v1533_v33  ;;  %v1635_v35 = vpop.permute.xlu2 %1634  ;;  %vm2979_vm12 = vmmov %vm2977_vm3 }
 0x2e7   : > { %1550 = vst.msk [vmem:[#allocation4 + $0x20] sm:$0xff] %vm2975_vm13, %v1545_v32 }
 0x2ec   : > { %v1621_v38 = vpop.permute.xlu0 %1620 }
 0x2ed   : > { %v1623_v36 = vpop.permute.xlu1 %1622  ;;  %1626 = vst.msk [vmem:[#allocation4 + $0x28] sm:$0xff] %vm349_vm4, %v1621_v38 }
 0x2ee   : > { %1627 = vst.msk [vmem:[#allocation4 + $0x38] sm:$0xff] %vm349_vm4, %v1623_v36  ;;  %v1645_v31 = vpop.permute.xlu2 %1644  ;;  %vm2980_vm4 = vmmov %vm2978_vm14 }
 0x2ef   : > { %1639 = vst.msk [vmem:[#allocation4 + $0x38] sm:$0xff] %vm362_vm5, %v1635_v35 }
 0x2f4   : > { %v1547_v42 = vpop.permute.xlu0 %1546 }
 0x2f5   : > { %v1633_v41 = vpop.permute.xlu1 %1632  ;;  %1551 = vst.msk [vmem:[#allocation4 + $0x30] sm:$0xff] %vm2976_vm2, %v1547_v42 }
 0x2f6   : > { %1638 = vst.msk [vmem:[#allocation4 + $0x28] sm:$0xff] %vm362_vm5, %v1633_v41  ;;  %v1571_v37 = vpop.permute.xlu2 %1570  ;;  %vm1696_vm5 = vcmp.gt.f32.partialorder %v1688_v46, 0.5 }
 0x2f7   : > { %1650 = vst.msk [vmem:[#allocation4 + $0x28] sm:$0xff] %vm375_vm6, %v1645_v31  ;;  %vm2050_vm9 = vmpackc.low %vm1698_vm11, %vm1696_vm5 }
 0x2fc   : > { %v1557_v40 = vpop.permute.xlu0 %1556 }
 0x2fd   : > { %v1559_v43 = vpop.permute.xlu1 %1558  ;;  %1562 = vst.msk [vmem:[#allocation4 + $0x20] sm:$0xff] %vm2979_vm12, %v1557_v40 }
 0x2fe   : > { %1563 = vst.msk [vmem:[#allocation4 + $0x30] sm:$0xff] %vm2977_vm3, %v1559_v43  ;;  %v1669_v47 = vpop.permute.xlu2 %1668 }
 0x2ff   : > { %1575 = vst.msk [vmem:[#allocation4 + $0x30] sm:$0xff] %vm2978_vm14, %v1571_v37 }
 0x304   : > { %v1647_v45 = vpop.permute.xlu0 %1646 }
 0x305   : > { %v1569_v44 = vpop.permute.xlu1 %1568  ;;  %1651 = vst.msk [vmem:[#allocation4 + $0x38] sm:$0xff] %vm375_vm6, %v1647_v45  ;;  %vm1697_vm6 = vcmp.gt.f32.partialorder %v1689_v54, 0.5 }
 0x306   : > { %1574 = vst.msk [vmem:[#allocation4 + $0x20] sm:$0xff] %vm2980_vm4, %v1569_v44  ;;  %v1682_v50 = vld [vmem:[#allocation4 + $0x30] sm:$0xff] }
 0x30c   : > { %v1657_v48 = vpop.permute.xlu0 %1656 }
 0x30d   : > { %v1680_v49 = vld [vmem:[#allocation4 + $0x20] sm:$0xff]  ;;  %v1659_v51 = vpop.permute.xlu1 %1658  ;;  %1662 = vst.msk [vmem:[#allocation4 + $0x28] sm:$0xff] %vm388_vm7, %v1657_v48 }
 0x30e   : > { %v2051_v52 = vpack.c.bf16 %v1682_v50, %v1680_v49  ;;  %1663 = vst.msk [vmem:[#allocation4 + $0x38] sm:$0xff] %vm388_vm7, %v1659_v51 }
 0x30f   : > { %1674 = vst.msk [vmem:[#allocation4 + $0x28] sm:$0xff] %vm401_vm8, %v1669_v47 }
 0x310   : > { %2052 = vmatmul.msk.bf16.gmra.mxu2 %vm2050_vm9, %v2051_v52 }
 0x314   : > { %v1671_v53 = vpop.permute.xlu0 %1670 }
 0x315   : > { %1675 = vst.msk [vmem:[#allocation4 + $0x38] sm:$0xff] %vm401_vm8, %v1671_v53 }
 0x316   : > { %v1681_v56 = vld [vmem:[#allocation4 + $0x28] sm:$0xff] }
 0x317   : > { %v1705_v57 = vsel %vm1697_vm6, %v1681_v56, 0.0 }
 0x31b   : > { %v1834_v62 = vpop.f32.mrf.mxu2 }
 0x31c   : > { %v1683_v58 = vld [vmem:[#allocation4 + $0x38] sm:$0xff]  ;;  %v1835_v5 = vadd.f32 %v2109_v3, %v1834_v62 }
 0x31d   : > { %v1707_v59 = vsel %vm1699_vm10, %v1683_v58, 0.0 }
 0x31e   : > { %v1711_v61 = vpack.c.bf16 %v1707_v59, %v1705_v57 }
 0x320   : > { %2054 = vmatmul.msk.bf16.gmra.mxu3 %vm1019_vm15, %v1711_v61 }
 0x323   : > { %v1836_v2 = vpop.f32.mrf.mxu2 }
 0x324   : > { %v1837_v13 = vadd.f32 %v2109_v3, %v1836_v2 }
 0x325   : > { %v1853_v63 = vpop.f32.mrf.mxu3 }
 0x326   : > { %v1854_v9 = vadd.f32 %v1853_v63, %v1835_v5 }
 0x328   : > { %v1866_v60 = vmul.f32 %v1865_v10, %v1854_v9 }
 0x32a   : > { %v1868_v7 = vadd.f32 %v1866_v60, %v2224_v0 }
 0x32d   : > { %v1855_v4 = vpop.f32.mrf.mxu3 }
 0x32e   : > { %v1856_v15 = vadd.f32 %v1855_v4, %v1837_v13 }
 0x330   : > { %v1867_v19 = vmul.f32 %v1865_v10, %v1856_v15 }
 0x332   : > { %v1869_v23 = vadd.f32 %v1867_v19, %v2226_v1 }
 0x393   : > { %v1839_v6 = vpop.f32.mrf.mxu2 }
 0x394   : > { %v1840_v8 = vadd.f32 %v2109_v3, %v1839_v6 }
 0x39b   : > { %v1841_v17 = vpop.f32.mrf.mxu2 }
 0x39c   : > { %v1842_v20 = vadd.f32 %v2109_v3, %v1841_v17 }
 0x3a3   : > { %v1858_v11 = vpop.f32.mrf.mxu3 }
 0x3a4   : > { %v1859_v14 = vadd.f32 %v1858_v11, %v1840_v8 }
 0x3a6   : > { %v1873_v16 = vmul.f32 %v1872_v12, %v1859_v14 }
 0x3a8   : > { %v1875_v18 = vadd.f32 %v1873_v16, %v1868_v7 }
 0x3aa   : > { %1877 = vst.msk [vmem:[%s287_s19] sm:$0xff] %vm291_vm0, %v1875_v18 }
 0x3ab   : > { %v1860_v21 = vpop.f32.mrf.mxu3 }
 0x3ac   : > { %v1861_v22 = vadd.f32 %v1860_v21, %v1842_v20 }
 0x3ae   : > { %v1874_v24 = vmul.f32 %v1872_v12, %v1861_v22 }
 0x3b0   : > { %v1876_v25 = vadd.f32 %v1874_v24, %v1869_v23 }
 0x3b2   : > { %1878 = vst.msk [vmem:[%s287_s19 + $0x8] sm:$0xff] %vm291_vm0, %v1876_v25 }
 0x3b3 PF: > { %s26_s9 = sadd.s32 1, %s2138_s9  }
 0x3b4   : > { %p23_p4 = scmp.ge.s32.totalorder %s26_s9, 4  }
 0x3b6   :  { %25 = sbr.rel (!%p23_p4) target bundleno = 7 (0x7), region = 78 }

</bundles_post_ra>
